<compile_context>
chip_gen: v7x
topology: tpu7x:2x2x1
jax: 0.10.0
libtpu: 0.0.40
codegen_flags: <defaults>
</compile_context>

<pallas_src>
import functools
import math

import jax
import jax.numpy as jnp
from jax import lax
from jax.experimental import pallas as pl
from jax.experimental.pallas import tpu as pltpu


def mha_kernel(q_ref, kp_ref, vp_ref, wq_ref, bq_ref, wf_ref, bf_ref,
               out_ref, attn_ref, acc_ref,
               *, num_heads, head_dim, mm_dtype, approx_recip):
    f32 = jnp.float32
    inv_scale = 1.0 / math.sqrt(head_dim)

    # Q projection for this query tile (f32 accumulate), bias, fold the
    # 1/sqrt(head_dim) scale in once, then ONE lane-dense cast to the MXU dtype.
    qp = jnp.dot(q_ref[0], wq_ref[...], preferred_element_type=f32) + bq_ref[0]
    qp = (qp * inv_scale).astype(mm_dtype)            # (TQ, D)
    kp = kp_ref[0]                                    # (S, D), already mm_dtype
    vp = vp_ref[0]                                    # (S, D), already mm_dtype

    # Contract last dims (no materialized per-head K transpose).
    qk_dims = (((1,), (1,)), ((), ()))

    # NOTE: head_dim < 128 underfills the MXU contraction for QK/PV and makes
    # the acc_ref lane-slice stores masked; keep tq large to fill the M dim.
    for h in range(num_heads):                        # static unroll over heads
        lo, hi = h * head_dim, (h + 1) * head_dim
        qh = qp[:, lo:hi]                             # (TQ, hd)
        kh = kp[:, lo:hi]                             # (S,  hd)
        vh = vp[:, lo:hi]                             # (S,  hd)

        scores = lax.dot_general(qh, kh, dimension_numbers=qk_dims,
                                 preferred_element_type=f32)      # (TQ, S)
        # TODO(synk): optional `mask` argument (masked_fill with -inf) is not
        # implemented; the reference forward default is mask=None.

        # Numerically-stable softmax over keys; EUP reciprocal + VPU multiply.
        m = jnp.max(scores, axis=-1, keepdims=True)
        e = jnp.exp(scores - m)
        # TODO(synk): optional v6e/v7x micro-opt: run the exp in bf16.
        p = e * pl.reciprocal(jnp.sum(e, axis=-1, keepdims=True),
                              approx=approx_recip)

        attn_ref[0, h] = p.astype(attn_ref.dtype)                 # (TQ, S)
        # PV written straight into the persistent (TQ, D) scratch slab.
        acc_ref[:, lo:hi] = jnp.dot(p.astype(mm_dtype), vh,
                                    preferred_element_type=f32)

    out_ref[0] = (jnp.dot(acc_ref[...].astype(mm_dtype), wf_ref[...],
                          preferred_element_type=f32)
                  + bf_ref[0]).astype(out_ref.dtype)


def _vmem_budget_bytes():
    """~80% of this generation's physical VMEM (v5e/v6e 128 MiB, v7x 64 MiB)."""
    cap = 64 * 1024 * 1024  # conservative fallback (v7x per-core)
    try:
        cap = int(getattr(pltpu.get_tpu_info(), "vmem_capacity_bytes", cap))
    except Exception:
        pass
    return max(16 * 1024 * 1024, int(cap * 0.8))


def _footprint_bytes(tq, S, D, H, mm_bytes, attn_bytes, single_buf_weights):
    """Rough per-step VMEM footprint for tile choice (double-buffered I/O)."""
    wbuf = 1 if single_buf_weights else 2
    return (2 * tq * D * mm_bytes            # q tile
            + 2 * 2 * S * D * mm_bytes       # kp + vp tiles
            + wbuf * 2 * D * D * mm_bytes    # Wq + Wf
            + wbuf * 2 * D * 4               # bq + bf
            + 2 * tq * D * 4                 # out tile
            + 2 * H * tq * S * attn_bytes    # attn tile (usual limiter)
            + tq * D * 4)                    # f32 accumulator scratch


def _pick_tq(S, D, H, mm_bytes, attn_bytes, budget, single_buf_weights):
    cands = [c for c in (1024, 512, 256, 128, 64, 32, 16, 8)
             if c < S and S % c == 0]
    cands = [S] + cands                      # whole sequence first if it fits
    for tq in cands:
        if _footprint_bytes(tq, S, D, H, mm_bytes, attn_bytes,
                            single_buf_weights) <= budget:
            return tq
    return cands[-1]


def multi_head_attention(q, k, v, params, *, num_heads,
                         q_block=None,
                         mm_dtype=jnp.bfloat16,
                         attn_dtype=jnp.bfloat16,
                         approx_recip=True,
                         single_buffer_weights=True):
    """q, k, v: (B, S, D).  params: weights (D_in, D_out), biases (D,).

    Returns (out (B,S,D) in q.dtype, attn_weights (B,H,S,S) in attn_dtype)."""
    B, S, D = q.shape
    head_dim = D // num_heads
    assert head_dim * num_heads == D, "dim_model must be divisible by num_heads"
    f32 = jnp.float32

    mm_bytes = jnp.dtype(mm_dtype).itemsize
    attn_bytes = jnp.dtype(attn_dtype).itemsize
    budget = _vmem_budget_bytes()

    if q_block is None:
        tq = _pick_tq(S, D, num_heads, mm_bytes, attn_bytes, budget,
                      single_buffer_weights)
    else:
        tq = min(q_block, S)
    assert S % tq == 0, "seq_len must be divisible by the query tile"
    n_q = S // tq

    # ---- hoisted, non-redundant work (runs ONCE, outside the grid) ---------
    # K/V projections as plain XLA GEMMs (f32 accumulate), then a single cast
    # to the MXU dtype; recomputing them per query block was the dominant cost.
    kp = (k.astype(f32) @ params["wk"] + params["bk"]).astype(mm_dtype)
    vp = (v.astype(f32) @ params["wv"] + params["bv"]).astype(mm_dtype)
    q_mm = q.astype(mm_dtype)
    wq = params["wq"].astype(mm_dtype)
    wf = params["wf"].astype(mm_dtype)
    bq = params["bq"].reshape(1, D).astype(f32)
    bf = params["bf"].reshape(1, D).astype(f32)

    kernel = functools.partial(mha_kernel, num_heads=num_heads,
                               head_dim=head_dim, mm_dtype=mm_dtype,
                               approx_recip=approx_recip)

    def build(single_buf):
        if single_buf:
            # Constant-index weights/biases: single-buffer to save VMEM.
            w_spec = pl.BlockSpec((D, D), lambda b, qb: (0, 0),
                                  pipeline_mode=pl.Buffered(1))
            b_spec = pl.BlockSpec((1, D), lambda b, qb: (0, 0),
                                  pipeline_mode=pl.Buffered(1))
        else:
            w_spec = pl.BlockSpec((D, D), lambda b, qb: (0, 0))
            b_spec = pl.BlockSpec((1, D), lambda b, qb: (0, 0))
        q_spec = pl.BlockSpec((1, tq, D), lambda b, qb: (b, qb, 0))
        kv_spec = pl.BlockSpec((1, S, D), lambda b, qb: (b, 0, 0))
        return pl.pallas_call(
            kernel,
            out_shape=(
                jax.ShapeDtypeStruct((B, S, D), q.dtype),
                jax.ShapeDtypeStruct((B, num_heads, S, S), attn_dtype),
            ),
            grid_spec=pltpu.PrefetchScalarGridSpec(
                num_scalar_prefetch=0,
                grid=(B, n_q),
                in_specs=[q_spec, kv_spec, kv_spec,   # q tile, projected K, V
                          w_spec, b_spec,             # Wq, bq
                          w_spec, b_spec],            # Wf, bf
                out_specs=[
                    pl.BlockSpec((1, tq, D), lambda b, qb: (b, qb, 0)),
                    pl.BlockSpec((1, num_heads, tq, S),
                                 lambda b, qb: (b, 0, qb, 0)),
                ],
                scratch_shapes=[pltpu.VMEM((tq, D), jnp.float32)]),
            compiler_params=pltpu.CompilerParams(
                # Both axes parallel so v7x's two TensorCores shard the grid.
                dimension_semantics=("parallel", "parallel"),
                vmem_limit_bytes=budget),
        )

    args = (q_mm, kp, vp, wq, bq, wf, bf)
    if single_buffer_weights:
        try:
            return build(True)(*args)
        except Exception:
            pass  # fall back to default double-buffering if Buffered(1) rejected
    return build(False)(*args)


def init_params(key, dim_model):
    """Weights: xavier_uniform on torch's (out,in) layout, transposed to (in,out).
    Biases: uniform(-1/sqrt(fan_in), 1/sqrt(fan_in)) like torch.nn.Linear."""
    keys = jax.random.split(key, 8)
    limit_w = math.sqrt(6.0 / (dim_model + dim_model))
    limit_b = 1.0 / math.sqrt(dim_model)

    def w(k):
        return jax.random.uniform(k, (dim_model, dim_model), jnp.float32,
                                  -limit_w, limit_w).T

    def b(k):
        return jax.random.uniform(k, (dim_model,), jnp.float32, -limit_b, limit_b)

    return {
        "wq": w(keys[0]), "bq": b(keys[1]),
        "wk": w(keys[2]), "bk": b(keys[3]),
        "wv": w(keys[4]), "bv": b(keys[5]),
        "wf": w(keys[6]), "bf": b(keys[7]),
    }


def reference(q, k, v, params, num_heads):
    """Pure-JAX reference mirroring the PyTorch forward (mask=None)."""
    B, S, D = q.shape
    hd = D // num_heads
    qp = q @ params["wq"] + params["bq"]
    kp = k @ params["wk"] + params["bk"]
    vp = v @ params["wv"] + params["bv"]
    qh = qp.reshape(B, S, num_heads, hd).transpose(0, 2, 1, 3)
    kh = kp.reshape(B, S, num_heads, hd).transpose(0, 2, 1, 3)
    vh = vp.reshape(B, S, num_heads, hd).transpose(0, 2, 1, 3)
    scores = jnp.einsum("bhqd,bhkd->bhqk", qh, kh) / math.sqrt(hd)
    attn = jax.nn.softmax(scores, axis=-1)
    out = jnp.einsum("bhqk,bhkd->bhqd", attn, vh)
    out = out.transpose(0, 2, 1, 3).reshape(B, S, D)
    return out @ params["wf"] + params["bf"], attn


if __name__ == "__main__":
    B, S, D, H = 2, 8, 32, 4

    key = jax.random.PRNGKey(0)
    key_q, key_k, key_v, key_p = jax.random.split(key, 4)
    q = jax.random.normal(key_q, (B, S, D), jnp.float32)
    k = jax.random.normal(key_k, (B, S, D), jnp.float32)
    v = jax.random.normal(key_v, (B, S, D), jnp.float32)
    params = init_params(key_p, D)

    out_ref, attn_ref = reference(q, k, v, params, H)

    # 1) exact-semantics path (f32 MXU feed, exact reciprocal): tight check.
    out32, attn32 = multi_head_attention(
        q, k, v, params, num_heads=H,
        mm_dtype=jnp.float32, attn_dtype=jnp.float32, approx_recip=False)
    jax.block_until_ready((out32, attn32))
    assert out32.shape == (B, S, D) and attn32.shape == (B, H, S, S)
    assert jnp.allclose(out32, out_ref, atol=1e-4, rtol=1e-4)
    assert jnp.allclose(attn32, attn_ref, atol=1e-4, rtol=1e-4)

    # 2) fast default path (bf16 MXU feed, bf16 attn weights, approx recip):
    #    looser tolerance -- expected precision change, not a bug.
    out_bf, attn_bf = multi_head_attention(q, k, v, params, num_heads=H)
    jax.block_until_ready((out_bf, attn_bf))
    assert out_bf.shape == (B, S, D) and attn_bf.shape == (B, H, S, S)
    assert jnp.allclose(out_bf.astype(jnp.float32), out_ref, atol=2e-1, rtol=2e-1)
    assert jnp.allclose(attn_bf.astype(jnp.float32), attn_ref, atol=1e-1, rtol=1e-1)

    print("KERNEL_OK")
</pallas_src>

<mosaic_0001>
module attributes {stable_mosaic.version = 11 : i64} {
  func.func @mha_kernel(%arg0: i32, %arg1: i32, %arg2: memref<1x8x32xf32, #tpu.memory_space<vmem>>, %arg3: memref<1x8x32xf32, #tpu.memory_space<vmem>>, %arg4: memref<1x8x32xf32, #tpu.memory_space<vmem>>, %arg5: memref<32x32xf32, #tpu.memory_space<vmem>>, %arg6: memref<1x32xf32, #tpu.memory_space<vmem>>, %arg7: memref<32x32xf32, #tpu.memory_space<vmem>>, %arg8: memref<1x32xf32, #tpu.memory_space<vmem>>, %arg9: memref<1x8x32xf32, #tpu.memory_space<vmem>>, %arg10: memref<1x4x8x8xf32, #tpu.memory_space<vmem>>, %arg11: memref<8x32xf32, #tpu.memory_space<vmem>>) attributes {dimension_semantics = [#tpu.dimension_semantics<parallel>, #tpu.dimension_semantics<parallel>], iteration_bounds = array<i64: 2, 1>, scalar_prefetch = 0 : i64, scratch_operands = 1 : i64, tpu.core_type = #tpu.core_type<tc>, window_params = [{transform_indices = @transform_0, window_bounds = array<i64: 1, 8, 32>}, {transform_indices = @transform_1, window_bounds = array<i64: 1, 8, 32>}, {transform_indices = @transform_2, window_bounds = array<i64: 1, 8, 32>}, {pipeline_mode = #tpu.pipeline_mode<synchronous>, transform_indices = @transform_3, window_bounds = array<i64: 32, 32>}, {pipeline_mode = #tpu.pipeline_mode<synchronous>, transform_indices = @transform_4, window_bounds = array<i64: 1, 32>}, {pipeline_mode = #tpu.pipeline_mode<synchronous>, transform_indices = @transform_5, window_bounds = array<i64: 32, 32>}, {pipeline_mode = #tpu.pipeline_mode<synchronous>, transform_indices = @transform_6, window_bounds = array<i64: 1, 32>}, {transform_indices = @transform_7, window_bounds = array<i64: 1, 8, 32>}, {transform_indices = @transform_8, window_bounds = array<i64: 1, 4, 8, 8>}]} {
    %c0 = arith.constant 0 : index
    %c0_0 = arith.constant 0 : index
    %c0_1 = arith.constant 0 : index
    %0 = vector.load %arg2[%c0, %c0_0, %c0_1] : memref<1x8x32xf32, #tpu.memory_space<vmem>>, vector<1x8x32xf32>
    %1 = vector.shape_cast %0 : vector<1x8x32xf32> to vector<8x32xf32>
    %c0_2 = arith.constant 0 : index
    %c0_3 = arith.constant 0 : index
    %2 = vector.load %arg5[%c0_2, %c0_3] : memref<32x32xf32, #tpu.memory_space<vmem>>, vector<32x32xf32>
    %cst = arith.constant dense<0.000000e+00> : vector<8x32xf32>
    %3 = tpu.matmul %1, %2, %cst {dimension_numbers = #tpu.dot_dimension_numbers<[1], [0], [0], [1], [0, 0, 1, 1], [], []>} : vector<8x32xf32>, vector<32x32xf32>, vector<8x32xf32> -> vector<8x32xf32>
    %c0_4 = arith.constant 0 : index
    %c0_5 = arith.constant 0 : index
    %4 = vector.load %arg6[%c0_4, %c0_5] : memref<1x32xf32, #tpu.memory_space<vmem>>, vector<1x32xf32>
    %5 = vector.shape_cast %4 : vector<1x32xf32> to vector<32xf32>
    %6 = vector.shape_cast %5 : vector<32xf32> to vector<1x32xf32>
    %7 = vector.broadcast %6 : vector<1x32xf32> to vector<8x32xf32>
    %8 = arith.addf %3, %7 : vector<8x32xf32>
    %cst_6 = arith.constant 0.353553385 : f32
    %9 = vector.broadcast %cst_6 : f32 to vector<8x32xf32>
    %10 = arith.mulf %8, %9 : vector<8x32xf32>
    %c0_7 = arith.constant 0 : index
    %c0_8 = arith.constant 0 : index
    %c0_9 = arith.constant 0 : index
    %11 = vector.load %arg3[%c0_7, %c0_8, %c0_9] : memref<1x8x32xf32, #tpu.memory_space<vmem>>, vector<1x8x32xf32>
    %12 = vector.shape_cast %11 : vector<1x8x32xf32> to vector<8x32xf32>
    %c0_10 = arith.constant 0 : index
    %c0_11 = arith.constant 0 : index
    %c0_12 = arith.constant 0 : index
    %13 = vector.load %arg4[%c0_10, %c0_11, %c0_12] : memref<1x8x32xf32, #tpu.memory_space<vmem>>, vector<1x8x32xf32>
    %14 = vector.shape_cast %13 : vector<1x8x32xf32> to vector<8x32xf32>
    %15 = vector.extract_strided_slice %10 {offsets = [0, 0], sizes = [8, 8], strides = [1, 1]} : vector<8x32xf32> to vector<8x8xf32>
    %16 = vector.extract_strided_slice %12 {offsets = [0, 0], sizes = [8, 8], strides = [1, 1]} : vector<8x32xf32> to vector<8x8xf32>
    %17 = vector.extract_strided_slice %14 {offsets = [0, 0], sizes = [8, 8], strides = [1, 1]} : vector<8x32xf32> to vector<8x8xf32>
    %cst_13 = arith.constant dense<0.000000e+00> : vector<8x8xf32>
    %18 = tpu.matmul %15, %16, %cst_13 {dimension_numbers = #tpu.dot_dimension_numbers<[1], [1], [0], [0], [0, 0, 1, 0], [], []>} : vector<8x8xf32>, vector<8x8xf32>, vector<8x8xf32> -> vector<8x8xf32>
    %cst_14 = arith.constant dense<0xFF800000> : vector<8xf32>
    %19 = vector.multi_reduction <maximumf>, %18, %cst_14 [1] : vector<8x8xf32> to vector<8xf32>
    %20 = vector.shape_cast %19 : vector<8xf32> to vector<8x1xf32>
    %21 = vector.broadcast %20 : vector<8x1xf32> to vector<8x8xf32>
    %22 = arith.subf %18, %21 : vector<8x8xf32>
    %23 = math.exp %22 : vector<8x8xf32>
    %cst_15 = arith.constant dense<0.000000e+00> : vector<8xf32>
    %24 = vector.multi_reduction <add>, %23, %cst_15 [1] : vector<8x8xf32> to vector<8xf32>
    %25 = vector.shape_cast %24 : vector<8xf32> to vector<8x1xf32>
    %26 = tpu.reciprocal %25 : vector<8x1xf32> -> vector<8x1xf32>
    %27 = vector.broadcast %26 : vector<8x1xf32> to vector<8x8xf32>
    %28 = arith.mulf %23, %27 : vector<8x8xf32>
    %c0_16 = arith.constant 0 : index
    %c0_17 = arith.constant 0 : index
    %c0_18 = arith.constant 0 : index
    %c0_19 = arith.constant 0 : index
    %29 = vector.load %arg10[%c0_16, %c0_17, %c0_18, %c0_19] : memref<1x4x8x8xf32, #tpu.memory_space<vmem>>, vector<1x1x8x8xf32>
    %30 = vector.shape_cast %29 : vector<1x1x8x8xf32> to vector<8x8xf32>
    %31 = vector.shape_cast %28 : vector<8x8xf32> to vector<1x1x8x8xf32>
    tpu.vector_store %arg10[%c0_16, %c0_17, %c0_18, %c0_19], %31 {strides = array<i32>} : memref<1x4x8x8xf32, #tpu.memory_space<vmem>>, vector<1x1x8x8xf32>,
    %cst_20 = arith.constant dense<0.000000e+00> : vector<8x8xf32>
    %32 = tpu.matmul %28, %17, %cst_20 {dimension_numbers = #tpu.dot_dimension_numbers<[1], [0], [0], [1], [0, 0, 1, 1], [], []>} : vector<8x8xf32>, vector<8x8xf32>, vector<8x8xf32> -> vector<8x8xf32>
    %c0_21 = arith.constant 0 : index
    %c0_22 = arith.constant 0 : index
    %33 = vector.load %arg11[%c0_21, %c0_22] : memref<8x32xf32, #tpu.memory_space<vmem>>, vector<8x8xf32>
    tpu.vector_store %arg11[%c0_21, %c0_22], %32 {strides = array<i32>} : memref<8x32xf32, #tpu.memory_space<vmem>>, vector<8x8xf32>,
    %34 = vector.extract_strided_slice %10 {offsets = [0, 8], sizes = [8, 8], strides = [1, 1]} : vector<8x32xf32> to vector<8x8xf32>
    %35 = vector.extract_strided_slice %12 {offsets = [0, 8], sizes = [8, 8], strides = [1, 1]} : vector<8x32xf32> to vector<8x8xf32>
    %36 = vector.extract_strided_slice %14 {offsets = [0, 8], sizes = [8, 8], strides = [1, 1]} : vector<8x32xf32> to vector<8x8xf32>
    %cst_23 = arith.constant dense<0.000000e+00> : vector<8x8xf32>
    %37 = tpu.matmul %34, %35, %cst_23 {dimension_numbers = #tpu.dot_dimension_numbers<[1], [1], [0], [0], [0, 0, 1, 0], [], []>} : vector<8x8xf32>, vector<8x8xf32>, vector<8x8xf32> -> vector<8x8xf32>
    %cst_24 = arith.constant dense<0xFF800000> : vector<8xf32>
    %38 = vector.multi_reduction <maximumf>, %37, %cst_24 [1] : vector<8x8xf32> to vector<8xf32>
    %39 = vector.shape_cast %38 : vector<8xf32> to vector<8x1xf32>
    %40 = vector.broadcast %39 : vector<8x1xf32> to vector<8x8xf32>
    %41 = arith.subf %37, %40 : vector<8x8xf32>
    %42 = math.exp %41 : vector<8x8xf32>
    %cst_25 = arith.constant dense<0.000000e+00> : vector<8xf32>
    %43 = vector.multi_reduction <add>, %42, %cst_25 [1] : vector<8x8xf32> to vector<8xf32>
    %44 = vector.shape_cast %43 : vector<8xf32> to vector<8x1xf32>
    %45 = tpu.reciprocal %44 : vector<8x1xf32> -> vector<8x1xf32>
    %46 = vector.broadcast %45 : vector<8x1xf32> to vector<8x8xf32>
    %47 = arith.mulf %42, %46 : vector<8x8xf32>
    %c0_26 = arith.constant 0 : index
    %c1 = arith.constant 1 : index
    %c0_27 = arith.constant 0 : index
    %c0_28 = arith.constant 0 : index
    %48 = vector.load %arg10[%c0_26, %c1, %c0_27, %c0_28] : memref<1x4x8x8xf32, #tpu.memory_space<vmem>>, vector<1x1x8x8xf32>
    %49 = vector.shape_cast %48 : vector<1x1x8x8xf32> to vector<8x8xf32>
    %50 = vector.shape_cast %47 : vector<8x8xf32> to vector<1x1x8x8xf32>
    tpu.vector_store %arg10[%c0_26, %c1, %c0_27, %c0_28], %50 {strides = array<i32>} : memref<1x4x8x8xf32, #tpu.memory_space<vmem>>, vector<1x1x8x8xf32>,
    %cst_29 = arith.constant dense<0.000000e+00> : vector<8x8xf32>
    %51 = tpu.matmul %47, %36, %cst_29 {dimension_numbers = #tpu.dot_dimension_numbers<[1], [0], [0], [1], [0, 0, 1, 1], [], []>} : vector<8x8xf32>, vector<8x8xf32>, vector<8x8xf32> -> vector<8x8xf32>
    %c0_30 = arith.constant 0 : index
    %c8 = arith.constant 8 : index
    %52 = vector.load %arg11[%c0_30, %c8] : memref<8x32xf32, #tpu.memory_space<vmem>>, vector<8x8xf32>
    tpu.vector_store %arg11[%c0_30, %c8], %51 {strides = array<i32>} : memref<8x32xf32, #tpu.memory_space<vmem>>, vector<8x8xf32>,
    %53 = vector.extract_strided_slice %10 {offsets = [0, 16], sizes = [8, 8], strides = [1, 1]} : vector<8x32xf32> to vector<8x8xf32>
    %54 = vector.extract_strided_slice %12 {offsets = [0, 16], sizes = [8, 8], strides = [1, 1]} : vector<8x32xf32> to vector<8x8xf32>
    %55 = vector.extract_strided_slice %14 {offsets = [0, 16], sizes = [8, 8], strides = [1, 1]} : vector<8x32xf32> to vector<8x8xf32>
    %cst_31 = arith.constant dense<0.000000e+00> : vector<8x8xf32>
    %56 = tpu.matmul %53, %54, %cst_31 {dimension_numbers = #tpu.dot_dimension_numbers<[1], [1], [0], [0], [0, 0, 1, 0], [], []>} : vector<8x8xf32>, vector<8x8xf32>, vector<8x8xf32> -> vector<8x8xf32>
    %cst_32 = arith.constant dense<0xFF800000> : vector<8xf32>
    %57 = vector.multi_reduction <maximumf>, %56, %cst_32 [1] : vector<8x8xf32> to vector<8xf32>
    %58 = vector.shape_cast %57 : vector<8xf32> to vector<8x1xf32>
    %59 = vector.broadcast %58 : vector<8x1xf32> to vector<8x8xf32>
    %60 = arith.subf %56, %59 : vector<8x8xf32>
    %61 = math.exp %60 : vector<8x8xf32>
    %cst_33 = arith.constant dense<0.000000e+00> : vector<8xf32>
    %62 = vector.multi_reduction <add>, %61, %cst_33 [1] : vector<8x8xf32> to vector<8xf32>
    %63 = vector.shape_cast %62 : vector<8xf32> to vector<8x1xf32>
    %64 = tpu.reciprocal %63 : vector<8x1xf32> -> vector<8x1xf32>
    %65 = vector.broadcast %64 : vector<8x1xf32> to vector<8x8xf32>
    %66 = arith.mulf %61, %65 : vector<8x8xf32>
    %c0_34 = arith.constant 0 : index
    %c2 = arith.constant 2 : index
    %c0_35 = arith.constant 0 : index
    %c0_36 = arith.constant 0 : index
    %67 = vector.load %arg10[%c0_34, %c2, %c0_35, %c0_36] : memref<1x4x8x8xf32, #tpu.memory_space<vmem>>, vector<1x1x8x8xf32>
    %68 = vector.shape_cast %67 : vector<1x1x8x8xf32> to vector<8x8xf32>
    %69 = vector.shape_cast %66 : vector<8x8xf32> to vector<1x1x8x8xf32>
    tpu.vector_store %arg10[%c0_34, %c2, %c0_35, %c0_36], %69 {strides = array<i32>} : memref<1x4x8x8xf32, #tpu.memory_space<vmem>>, vector<1x1x8x8xf32>,
    %cst_37 = arith.constant dense<0.000000e+00> : vector<8x8xf32>
    %70 = tpu.matmul %66, %55, %cst_37 {dimension_numbers = #tpu.dot_dimension_numbers<[1], [0], [0], [1], [0, 0, 1, 1], [], []>} : vector<8x8xf32>, vector<8x8xf32>, vector<8x8xf32> -> vector<8x8xf32>
    %c0_38 = arith.constant 0 : index
    %c16 = arith.constant 16 : index
    %71 = vector.load %arg11[%c0_38, %c16] : memref<8x32xf32, #tpu.memory_space<vmem>>, vector<8x8xf32>
    tpu.vector_store %arg11[%c0_38, %c16], %70 {strides = array<i32>} : memref<8x32xf32, #tpu.memory_space<vmem>>, vector<8x8xf32>,
    %72 = vector.extract_strided_slice %10 {offsets = [0, 24], sizes = [8, 8], strides = [1, 1]} : vector<8x32xf32> to vector<8x8xf32>
    %73 = vector.extract_strided_slice %12 {offsets = [0, 24], sizes = [8, 8], strides = [1, 1]} : vector<8x32xf32> to vector<8x8xf32>
    %74 = vector.extract_strided_slice %14 {offsets = [0, 24], sizes = [8, 8], strides = [1, 1]} : vector<8x32xf32> to vector<8x8xf32>
    %cst_39 = arith.constant dense<0.000000e+00> : vector<8x8xf32>
    %75 = tpu.matmul %72, %73, %cst_39 {dimension_numbers = #tpu.dot_dimension_numbers<[1], [1], [0], [0], [0, 0, 1, 0], [], []>} : vector<8x8xf32>, vector<8x8xf32>, vector<8x8xf32> -> vector<8x8xf32>
    %cst_40 = arith.constant dense<0xFF800000> : vector<8xf32>
    %76 = vector.multi_reduction <maximumf>, %75, %cst_40 [1] : vector<8x8xf32> to vector<8xf32>
    %77 = vector.shape_cast %76 : vector<8xf32> to vector<8x1xf32>
    %78 = vector.broadcast %77 : vector<8x1xf32> to vector<8x8xf32>
    %79 = arith.subf %75, %78 : vector<8x8xf32>
    %80 = math.exp %79 : vector<8x8xf32>
    %cst_41 = arith.constant dense<0.000000e+00> : vector<8xf32>
    %81 = vector.multi_reduction <add>, %80, %cst_41 [1] : vector<8x8xf32> to vector<8xf32>
    %82 = vector.shape_cast %81 : vector<8xf32> to vector<8x1xf32>
    %83 = tpu.reciprocal %82 : vector<8x1xf32> -> vector<8x1xf32>
    %84 = vector.broadcast %83 : vector<8x1xf32> to vector<8x8xf32>
    %85 = arith.mulf %80, %84 : vector<8x8xf32>
    %c0_42 = arith.constant 0 : index
    %c3 = arith.constant 3 : index
    %c0_43 = arith.constant 0 : index
    %c0_44 = arith.constant 0 : index
    %86 = vector.load %arg10[%c0_42, %c3, %c0_43, %c0_44] : memref<1x4x8x8xf32, #tpu.memory_space<vmem>>, vector<1x1x8x8xf32>
    %87 = vector.shape_cast %86 : vector<1x1x8x8xf32> to vector<8x8xf32>
    %88 = vector.shape_cast %85 : vector<8x8xf32> to vector<1x1x8x8xf32>
    tpu.vector_store %arg10[%c0_42, %c3, %c0_43, %c0_44], %88 {strides = array<i32>} : memref<1x4x8x8xf32, #tpu.memory_space<vmem>>, vector<1x1x8x8xf32>,
    %cst_45 = arith.constant dense<0.000000e+00> : vector<8x8xf32>
    %89 = tpu.matmul %85, %74, %cst_45 {dimension_numbers = #tpu.dot_dimension_numbers<[1], [0], [0], [1], [0, 0, 1, 1], [], []>} : vector<8x8xf32>, vector<8x8xf32>, vector<8x8xf32> -> vector<8x8xf32>
    %c0_46 = arith.constant 0 : index
    %c24 = arith.constant 24 : index
    %90 = vector.load %arg11[%c0_46, %c24] : memref<8x32xf32, #tpu.memory_space<vmem>>, vector<8x8xf32>
    tpu.vector_store %arg11[%c0_46, %c24], %89 {strides = array<i32>} : memref<8x32xf32, #tpu.memory_space<vmem>>, vector<8x8xf32>,
    %c0_47 = arith.constant 0 : index
    %c0_48 = arith.constant 0 : index
    %91 = vector.load %arg11[%c0_47, %c0_48] : memref<8x32xf32, #tpu.memory_space<vmem>>, vector<8x32xf32>
    %c0_49 = arith.constant 0 : index
    %c0_50 = arith.constant 0 : index
    %92 = vector.load %arg7[%c0_49, %c0_50] : memref<32x32xf32, #tpu.memory_space<vmem>>, vector<32x32xf32>
    %cst_51 = arith.constant dense<0.000000e+00> : vector<8x32xf32>
    %93 = tpu.matmul %91, %92, %cst_51 {dimension_numbers = #tpu.dot_dimension_numbers<[1], [0], [0], [1], [0, 0, 1, 1], [], []>} : vector<8x32xf32>, vector<32x32xf32>, vector<8x32xf32> -> vector<8x32xf32>
    %c0_52 = arith.constant 0 : index
    %c0_53 = arith.constant 0 : index
    %94 = vector.load %arg8[%c0_52, %c0_53] : memref<1x32xf32, #tpu.memory_space<vmem>>, vector<1x32xf32>
    %95 = vector.shape_cast %94 : vector<1x32xf32> to vector<32xf32>
    %96 = vector.shape_cast %95 : vector<32xf32> to vector<1x32xf32>
    %97 = vector.broadcast %96 : vector<1x32xf32> to vector<8x32xf32>
    %98 = arith.addf %93, %97 : vector<8x32xf32>
    %c0_54 = arith.constant 0 : index
    %c0_55 = arith.constant 0 : index
    %c0_56 = arith.constant 0 : index
    %99 = vector.load %arg9[%c0_54, %c0_55, %c0_56] : memref<1x8x32xf32, #tpu.memory_space<vmem>>, vector<1x8x32xf32>
    %100 = vector.shape_cast %99 : vector<1x8x32xf32> to vector<8x32xf32>
    %101 = vector.shape_cast %98 : vector<8x32xf32> to vector<1x8x32xf32>
    tpu.vector_store %arg9[%c0_54, %c0_55, %c0_56], %101 {strides = array<i32>} : memref<1x8x32xf32, #tpu.memory_space<vmem>>, vector<1x8x32xf32>,
    return
  }
  func.func @transform_0(%arg0: i32, %arg1: i32) -> (i32, i32, i32) {
    %c0_i32 = arith.constant 0 : i32
    %c0_i32_0 = arith.constant 0 : i32
    return %arg0, %arg1, %c0_i32 : i32, i32, i32
  }
  func.func @transform_1(%arg0: i32, %arg1: i32) -> (i32, i32, i32) {
    %c0_i32 = arith.constant 0 : i32
    %c0_i32_0 = arith.constant 0 : i32
    %c0_i32_1 = arith.constant 0 : i32
    return %arg0, %c0_i32, %c0_i32_0 : i32, i32, i32
  }
  func.func @transform_2(%arg0: i32, %arg1: i32) -> (i32, i32, i32) {
    %c0_i32 = arith.constant 0 : i32
    %c0_i32_0 = arith.constant 0 : i32
    %c0_i32_1 = arith.constant 0 : i32
    return %arg0, %c0_i32, %c0_i32_0 : i32, i32, i32
  }
  func.func @transform_3(%arg0: i32, %arg1: i32) -> (i32, i32) {
    %c0_i32 = arith.constant 0 : i32
    %c0_i32_0 = arith.constant 0 : i32
    %c0_i32_1 = arith.constant 0 : i32
    return %c0_i32, %c0_i32_0 : i32, i32
  }
  func.func @transform_4(%arg0: i32, %arg1: i32) -> (i32, i32) {
    %c0_i32 = arith.constant 0 : i32
    %c0_i32_0 = arith.constant 0 : i32
    %c0_i32_1 = arith.constant 0 : i32
    return %c0_i32, %c0_i32_0 : i32, i32
  }
  func.func @transform_5(%arg0: i32, %arg1: i32) -> (i32, i32) {
    %c0_i32 = arith.constant 0 : i32
    %c0_i32_0 = arith.constant 0 : i32
    %c0_i32_1 = arith.constant 0 : i32
    return %c0_i32, %c0_i32_0 : i32, i32
  }
  func.func @transform_6(%arg0: i32, %arg1: i32) -> (i32, i32) {
    %c0_i32 = arith.constant 0 : i32
    %c0_i32_0 = arith.constant 0 : i32
    %c0_i32_1 = arith.constant 0 : i32
    return %c0_i32, %c0_i32_0 : i32, i32
  }
  func.func @transform_7(%arg0: i32, %arg1: i32) -> (i32, i32, i32) {
    %c0_i32 = arith.constant 0 : i32
    %c0_i32_0 = arith.constant 0 : i32
    return %arg0, %arg1, %c0_i32 : i32, i32, i32
  }
  func.func @transform_8(%arg0: i32, %arg1: i32) -> (i32, i32, i32, i32) {
    %c0_i32 = arith.constant 0 : i32
    %c0_i32_0 = arith.constant 0 : i32
    %c0_i32_1 = arith.constant 0 : i32
    return %arg0, %c0_i32, %arg1, %c0_i32_0 : i32, i32, i32, i32
  }
}

module attributes {stable_mosaic.version = 11 : i64} {
  func.func @mha_kernel(%arg0: i32, %arg1: i32, %arg2: memref<1x8x32xf32, #tpu.memory_space<vmem>>, %arg3: memref<1x8x32xf32, #tpu.memory_space<vmem>>, %arg4: memref<1x8x32xf32, #tpu.memory_space<vmem>>, %arg5: memref<32x32xf32, #tpu.memory_space<vmem>>, %arg6: memref<1x32xf32, #tpu.memory_space<vmem>>, %arg7: memref<32x32xf32, #tpu.memory_space<vmem>>, %arg8: memref<1x32xf32, #tpu.memory_space<vmem>>, %arg9: memref<1x8x32xf32, #tpu.memory_space<vmem>>, %arg10: memref<1x4x8x8xf32, #tpu.memory_space<vmem>>, %arg11: memref<8x32xf32, #tpu.memory_space<vmem>>) attributes {dimension_semantics = [#tpu.dimension_semantics<parallel>, #tpu.dimension_semantics<parallel>], iteration_bounds = array<i64: 2, 1>, scalar_prefetch = 0 : i64, scratch_operands = 1 : i64, tpu.core_type = #tpu.core_type<tc>, window_params = [{transform_indices = @transform_0, window_bounds = array<i64: 1, 8, 32>}, {transform_indices = @transform_1, window_bounds = array<i64: 1, 8, 32>}, {transform_indices = @transform_2, window_bounds = array<i64: 1, 8, 32>}, {pipeline_mode = #tpu.pipeline_mode<synchronous>, transform_indices = @transform_3, window_bounds = array<i64: 32, 32>}, {pipeline_mode = #tpu.pipeline_mode<synchronous>, transform_indices = @transform_4, window_bounds = array<i64: 1, 32>}, {pipeline_mode = #tpu.pipeline_mode<synchronous>, transform_indices = @transform_5, window_bounds = array<i64: 32, 32>}, {pipeline_mode = #tpu.pipeline_mode<synchronous>, transform_indices = @transform_6, window_bounds = array<i64: 1, 32>}, {transform_indices = @transform_7, window_bounds = array<i64: 1, 8, 32>}, {transform_indices = @transform_8, window_bounds = array<i64: 1, 4, 8, 8>}]} {
    %c0 = arith.constant 0 : index
    %c0_0 = arith.constant 0 : index
    %c0_1 = arith.constant 0 : index
    %0 = vector.load %arg2[%c0, %c0_0, %c0_1] : memref<1x8x32xf32, #tpu.memory_space<vmem>>, vector<1x8x32xf32>
    %1 = vector.shape_cast %0 : vector<1x8x32xf32> to vector<8x32xf32>
    %c0_2 = arith.constant 0 : index
    %c0_3 = arith.constant 0 : index
    %2 = vector.load %arg5[%c0_2, %c0_3] : memref<32x32xf32, #tpu.memory_space<vmem>>, vector<32x32xf32>
    %cst = arith.constant dense<0.000000e+00> : vector<8x32xf32>
    %3 = tpu.matmul %1, %2, %cst {dimension_numbers = #tpu.dot_dimension_numbers<[1], [0], [0], [1], [0, 0, 1, 1], [], []>} : vector<8x32xf32>, vector<32x32xf32>, vector<8x32xf32> -> vector<8x32xf32>
    %c0_4 = arith.constant 0 : index
    %c0_5 = arith.constant 0 : index
    %4 = vector.load %arg6[%c0_4, %c0_5] : memref<1x32xf32, #tpu.memory_space<vmem>>, vector<1x32xf32>
    %5 = vector.shape_cast %4 : vector<1x32xf32> to vector<32xf32>
    %6 = vector.shape_cast %5 : vector<32xf32> to vector<1x32xf32>
    %7 = vector.broadcast %6 : vector<1x32xf32> to vector<8x32xf32>
    %8 = arith.addf %3, %7 : vector<8x32xf32>
    %cst_6 = arith.constant 0.353553385 : f32
    %9 = vector.broadcast %cst_6 : f32 to vector<8x32xf32>
    %10 = arith.mulf %8, %9 : vector<8x32xf32>
    %c0_7 = arith.constant 0 : index
    %c0_8 = arith.constant 0 : index
    %c0_9 = arith.constant 0 : index
    %11 = vector.load %arg3[%c0_7, %c0_8, %c0_9] : memref<1x8x32xf32, #tpu.memory_space<vmem>>, vector<1x8x32xf32>
    %12 = vector.shape_cast %11 : vector<1x8x32xf32> to vector<8x32xf32>
    %c0_10 = arith.constant 0 : index
    %c0_11 = arith.constant 0 : index
    %c0_12 = arith.constant 0 : index
    %13 = vector.load %arg4[%c0_10, %c0_11, %c0_12] : memref<1x8x32xf32, #tpu.memory_space<vmem>>, vector<1x8x32xf32>
    %14 = vector.shape_cast %13 : vector<1x8x32xf32> to vector<8x32xf32>
    %15 = vector.extract_strided_slice %10 {offsets = [0, 0], sizes = [8, 8], strides = [1, 1]} : vector<8x32xf32> to vector<8x8xf32>
    %16 = vector.extract_strided_slice %12 {offsets = [0, 0], sizes = [8, 8], strides = [1, 1]} : vector<8x32xf32> to vector<8x8xf32>
    %17 = vector.extract_strided_slice %14 {offsets = [0, 0], sizes = [8, 8], strides = [1, 1]} : vector<8x32xf32> to vector<8x8xf32>
    %cst_13 = arith.constant dense<0.000000e+00> : vector<8x8xf32>
    %18 = tpu.matmul %15, %16, %cst_13 {dimension_numbers = #tpu.dot_dimension_numbers<[1], [1], [0], [0], [0, 0, 1, 0], [], []>} : vector<8x8xf32>, vector<8x8xf32>, vector<8x8xf32> -> vector<8x8xf32>
    %cst_14 = arith.constant dense<0xFF800000> : vector<8xf32>
    %19 = vector.multi_reduction <maximumf>, %18, %cst_14 [1] : vector<8x8xf32> to vector<8xf32>
    %20 = vector.shape_cast %19 : vector<8xf32> to vector<8x1xf32>
    %21 = vector.broadcast %20 : vector<8x1xf32> to vector<8x8xf32>
    %22 = arith.subf %18, %21 : vector<8x8xf32>
    %23 = math.exp %22 : vector<8x8xf32>
    %cst_15 = arith.constant dense<0.000000e+00> : vector<8xf32>
    %24 = vector.multi_reduction <add>, %23, %cst_15 [1] : vector<8x8xf32> to vector<8xf32>
    %25 = vector.shape_cast %24 : vector<8xf32> to vector<8x1xf32>
    %26 = tpu.reciprocal %25 : vector<8x1xf32> -> vector<8x1xf32>
    %27 = vector.broadcast %26 : vector<8x1xf32> to vector<8x8xf32>
    %28 = arith.mulf %23, %27 : vector<8x8xf32>
    %c0_16 = arith.constant 0 : index
    %c0_17 = arith.constant 0 : index
    %c0_18 = arith.constant 0 : index
    %c0_19 = arith.constant 0 : index
    %29 = vector.load %arg10[%c0_16, %c0_17, %c0_18, %c0_19] : memref<1x4x8x8xf32, #tpu.memory_space<vmem>>, vector<1x1x8x8xf32>
    %30 = vector.shape_cast %29 : vector<1x1x8x8xf32> to vector<8x8xf32>
    %31 = vector.shape_cast %28 : vector<8x8xf32> to vector<1x1x8x8xf32>
    tpu.vector_store %arg10[%c0_16, %c0_17, %c0_18, %c0_19], %31 {strides = array<i32>} : memref<1x4x8x8xf32, #tpu.memory_space<vmem>>, vector<1x1x8x8xf32>,
    %cst_20 = arith.constant dense<0.000000e+00> : vector<8x8xf32>
    %32 = tpu.matmul %28, %17, %cst_20 {dimension_numbers = #tpu.dot_dimension_numbers<[1], [0], [0], [1], [0, 0, 1, 1], [], []>} : vector<8x8xf32>, vector<8x8xf32>, vector<8x8xf32> -> vector<8x8xf32>
    %c0_21 = arith.constant 0 : index
    %c0_22 = arith.constant 0 : index
    %33 = vector.load %arg11[%c0_21, %c0_22] : memref<8x32xf32, #tpu.memory_space<vmem>>, vector<8x8xf32>
    tpu.vector_store %arg11[%c0_21, %c0_22], %32 {strides = array<i32>} : memref<8x32xf32, #tpu.memory_space<vmem>>, vector<8x8xf32>,
    %34 = vector.extract_strided_slice %10 {offsets = [0, 8], sizes = [8, 8], strides = [1, 1]} : vector<8x32xf32> to vector<8x8xf32>
    %35 = vector.extract_strided_slice %12 {offsets = [0, 8], sizes = [8, 8], strides = [1, 1]} : vector<8x32xf32> to vector<8x8xf32>
    %36 = vector.extract_strided_slice %14 {offsets = [0, 8], sizes = [8, 8], strides = [1, 1]} : vector<8x32xf32> to vector<8x8xf32>
    %cst_23 = arith.constant dense<0.000000e+00> : vector<8x8xf32>
    %37 = tpu.matmul %34, %35, %cst_23 {dimension_numbers = #tpu.dot_dimension_numbers<[1], [1], [0], [0], [0, 0, 1, 0], [], []>} : vector<8x8xf32>, vector<8x8xf32>, vector<8x8xf32> -> vector<8x8xf32>
    %cst_24 = arith.constant dense<0xFF800000> : vector<8xf32>
    %38 = vector.multi_reduction <maximumf>, %37, %cst_24 [1] : vector<8x8xf32> to vector<8xf32>
    %39 = vector.shape_cast %38 : vector<8xf32> to vector<8x1xf32>
    %40 = vector.broadcast %39 : vector<8x1xf32> to vector<8x8xf32>
    %41 = arith.subf %37, %40 : vector<8x8xf32>
    %42 = math.exp %41 : vector<8x8xf32>
    %cst_25 = arith.constant dense<0.000000e+00> : vector<8xf32>
    %43 = vector.multi_reduction <add>, %42, %cst_25 [1] : vector<8x8xf32> to vector<8xf32>
    %44 = vector.shape_cast %43 : vector<8xf32> to vector<8x1xf32>
    %45 = tpu.reciprocal %44 : vector<8x1xf32> -> vector<8x1xf32>
    %46 = vector.broadcast %45 : vector<8x1xf32> to vector<8x8xf32>
    %47 = arith.mulf %42, %46 : vector<8x8xf32>
    %c0_26 = arith.constant 0 : index
    %c1 = arith.constant 1 : index
    %c0_27 = arith.constant 0 : index
    %c0_28 = arith.constant 0 : index
    %48 = vector.load %arg10[%c0_26, %c1, %c0_27, %c0_28] : memref<1x4x8x8xf32, #tpu.memory_space<vmem>>, vector<1x1x8x8xf32>
    %49 = vector.shape_cast %48 : vector<1x1x8x8xf32> to vector<8x8xf32>
    %50 = vector.shape_cast %47 : vector<8x8xf32> to vector<1x1x8x8xf32>
    tpu.vector_store %arg10[%c0_26, %c1, %c0_27, %c0_28], %50 {strides = array<i32>} : memref<1x4x8x8xf32, #tpu.memory_space<vmem>>, vector<1x1x8x8xf32>,
    %cst_29 = arith.constant dense<0.000000e+00> : vector<8x8xf32>
    %51 = tpu.matmul %47, %36, %cst_29 {dimension_numbers = #tpu.dot_dimension_numbers<[1], [0], [0], [1], [0, 0, 1, 1], [], []>} : vector<8x8xf32>, vector<8x8xf32>, vector<8x8xf32> -> vector<8x8xf32>
    %c0_30 = arith.constant 0 : index
    %c8 = arith.constant 8 : index
    %52 = vector.load %arg11[%c0_30, %c8] : memref<8x32xf32, #tpu.memory_space<vmem>>, vector<8x8xf32>
    tpu.vector_store %arg11[%c0_30, %c8], %51 {strides = array<i32>} : memref<8x32xf32, #tpu.memory_space<vmem>>, vector<8x8xf32>,
    %53 = vector.extract_strided_slice %10 {offsets = [0, 16], sizes = [8, 8], strides = [1, 1]} : vector<8x32xf32> to vector<8x8xf32>
    %54 = vector.extract_strided_slice %12 {offsets = [0, 16], sizes = [8, 8], strides = [1, 1]} : vector<8x32xf32> to vector<8x8xf32>
    %55 = vector.extract_strided_slice %14 {offsets = [0, 16], sizes = [8, 8], strides = [1, 1]} : vector<8x32xf32> to vector<8x8xf32>
    %cst_31 = arith.constant dense<0.000000e+00> : vector<8x8xf32>
    %56 = tpu.matmul %53, %54, %cst_31 {dimension_numbers = #tpu.dot_dimension_numbers<[1], [1], [0], [0], [0, 0, 1, 0], [], []>} : vector<8x8xf32>, vector<8x8xf32>, vector<8x8xf32> -> vector<8x8xf32>
    %cst_32 = arith.constant dense<0xFF800000> : vector<8xf32>
    %57 = vector.multi_reduction <maximumf>, %56, %cst_32 [1] : vector<8x8xf32> to vector<8xf32>
    %58 = vector.shape_cast %57 : vector<8xf32> to vector<8x1xf32>
    %59 = vector.broadcast %58 : vector<8x1xf32> to vector<8x8xf32>
    %60 = arith.subf %56, %59 : vector<8x8xf32>
    %61 = math.exp %60 : vector<8x8xf32>
    %cst_33 = arith.constant dense<0.000000e+00> : vector<8xf32>
    %62 = vector.multi_reduction <add>, %61, %cst_33 [1] : vector<8x8xf32> to vector<8xf32>
    %63 = vector.shape_cast %62 : vector<8xf32> to vector<8x1xf32>
    %64 = tpu.reciprocal %63 : vector<8x1xf32> -> vector<8x1xf32>
    %65 = vector.broadcast %64 : vector<8x1xf32> to vector<8x8xf32>
    %66 = arith.mulf %61, %65 : vector<8x8xf32>
    %c0_34 = arith.constant 0 : index
    %c2 = arith.constant 2 : index
    %c0_35 = arith.constant 0 : index
    %c0_36 = arith.constant 0 : index
    %67 = vector.load %arg10[%c0_34, %c2, %c0_35, %c0_36] : memref<1x4x8x8xf32, #tpu.memory_space<vmem>>, vector<1x1x8x8xf32>
    %68 = vector.shape_cast %67 : vector<1x1x8x8xf32> to vector<8x8xf32>
    %69 = vector.shape_cast %66 : vector<8x8xf32> to vector<1x1x8x8xf32>
    tpu.vector_store %arg10[%c0_34, %c2, %c0_35, %c0_36], %69 {strides = array<i32>} : memref<1x4x8x8xf32, #tpu.memory_space<vmem>>, vector<1x1x8x8xf32>,
    %cst_37 = arith.constant dense<0.000000e+00> : vector<8x8xf32>
    %70 = tpu.matmul %66, %55, %cst_37 {dimension_numbers = #tpu.dot_dimension_numbers<[1], [0], [0], [1], [0, 0, 1, 1], [], []>} : vector<8x8xf32>, vector<8x8xf32>, vector<8x8xf32> -> vector<8x8xf32>
    %c0_38 = arith.constant 0 : index
    %c16 = arith.constant 16 : index
    %71 = vector.load %arg11[%c0_38, %c16] : memref<8x32xf32, #tpu.memory_space<vmem>>, vector<8x8xf32>
    tpu.vector_store %arg11[%c0_38, %c16], %70 {strides = array<i32>} : memref<8x32xf32, #tpu.memory_space<vmem>>, vector<8x8xf32>,
    %72 = vector.extract_strided_slice %10 {offsets = [0, 24], sizes = [8, 8], strides = [1, 1]} : vector<8x32xf32> to vector<8x8xf32>
    %73 = vector.extract_strided_slice %12 {offsets = [0, 24], sizes = [8, 8], strides = [1, 1]} : vector<8x32xf32> to vector<8x8xf32>
    %74 = vector.extract_strided_slice %14 {offsets = [0, 24], sizes = [8, 8], strides = [1, 1]} : vector<8x32xf32> to vector<8x8xf32>
    %cst_39 = arith.constant dense<0.000000e+00> : vector<8x8xf32>
    %75 = tpu.matmul %72, %73, %cst_39 {dimension_numbers = #tpu.dot_dimension_numbers<[1], [1], [0], [0], [0, 0, 1, 0], [], []>} : vector<8x8xf32>, vector<8x8xf32>, vector<8x8xf32> -> vector<8x8xf32>
    %cst_40 = arith.constant dense<0xFF800000> : vector<8xf32>
    %76 = vector.multi_reduction <maximumf>, %75, %cst_40 [1] : vector<8x8xf32> to vector<8xf32>
    %77 = vector.shape_cast %76 : vector<8xf32> to vector<8x1xf32>
    %78 = vector.broadcast %77 : vector<8x1xf32> to vector<8x8xf32>
    %79 = arith.subf %75, %78 : vector<8x8xf32>
    %80 = math.exp %79 : vector<8x8xf32>
    %cst_41 = arith.constant dense<0.000000e+00> : vector<8xf32>
    %81 = vector.multi_reduction <add>, %80, %cst_41 [1] : vector<8x8xf32> to vector<8xf32>
    %82 = vector.shape_cast %81 : vector<8xf32> to vector<8x1xf32>
    %83 = tpu.reciprocal %82 : vector<8x1xf32> -> vector<8x1xf32>
    %84 = vector.broadcast %83 : vector<8x1xf32> to vector<8x8xf32>
    %85 = arith.mulf %80, %84 : vector<8x8xf32>
    %c0_42 = arith.constant 0 : index
    %c3 = arith.constant 3 : index
    %c0_43 = arith.constant 0 : index
    %c0_44 = arith.constant 0 : index
    %86 = vector.load %arg10[%c0_42, %c3, %c0_43, %c0_44] : memref<1x4x8x8xf32, #tpu.memory_space<vmem>>, vector<1x1x8x8xf32>
    %87 = vector.shape_cast %86 : vector<1x1x8x8xf32> to vector<8x8xf32>
    %88 = vector.shape_cast %85 : vector<8x8xf32> to vector<1x1x8x8xf32>
    tpu.vector_store %arg10[%c0_42, %c3, %c0_43, %c0_44], %88 {strides = array<i32>} : memref<1x4x8x8xf32, #tpu.memory_space<vmem>>, vector<1x1x8x8xf32>,
    %cst_45 = arith.constant dense<0.000000e+00> : vector<8x8xf32>
    %89 = tpu.matmul %85, %74, %cst_45 {dimension_numbers = #tpu.dot_dimension_numbers<[1], [0], [0], [1], [0, 0, 1, 1], [], []>} : vector<8x8xf32>, vector<8x8xf32>, vector<8x8xf32> -> vector<8x8xf32>
    %c0_46 = arith.constant 0 : index
    %c24 = arith.constant 24 : index
    %90 = vector.load %arg11[%c0_46, %c24] : memref<8x32xf32, #tpu.memory_space<vmem>>, vector<8x8xf32>
    tpu.vector_store %arg11[%c0_46, %c24], %89 {strides = array<i32>} : memref<8x32xf32, #tpu.memory_space<vmem>>, vector<8x8xf32>,
    %c0_47 = arith.constant 0 : index
    %c0_48 = arith.constant 0 : index
    %91 = vector.load %arg11[%c0_47, %c0_48] : memref<8x32xf32, #tpu.memory_space<vmem>>, vector<8x32xf32>
    %c0_49 = arith.constant 0 : index
    %c0_50 = arith.constant 0 : index
    %92 = vector.load %arg7[%c0_49, %c0_50] : memref<32x32xf32, #tpu.memory_space<vmem>>, vector<32x32xf32>
    %cst_51 = arith.constant dense<0.000000e+00> : vector<8x32xf32>
    %93 = tpu.matmul %91, %92, %cst_51 {dimension_numbers = #tpu.dot_dimension_numbers<[1], [0], [0], [1], [0, 0, 1, 1], [], []>} : vector<8x32xf32>, vector<32x32xf32>, vector<8x32xf32> -> vector<8x32xf32>
    %c0_52 = arith.constant 0 : index
    %c0_53 = arith.constant 0 : index
    %94 = vector.load %arg8[%c0_52, %c0_53] : memref<1x32xf32, #tpu.memory_space<vmem>>, vector<1x32xf32>
    %95 = vector.shape_cast %94 : vector<1x32xf32> to vector<32xf32>
    %96 = vector.shape_cast %95 : vector<32xf32> to vector<1x32xf32>
    %97 = vector.broadcast %96 : vector<1x32xf32> to vector<8x32xf32>
    %98 = arith.addf %93, %97 : vector<8x32xf32>
    %c0_54 = arith.constant 0 : index
    %c0_55 = arith.constant 0 : index
    %c0_56 = arith.constant 0 : index
    %99 = vector.load %arg9[%c0_54, %c0_55, %c0_56] : memref<1x8x32xf32, #tpu.memory_space<vmem>>, vector<1x8x32xf32>
    %100 = vector.shape_cast %99 : vector<1x8x32xf32> to vector<8x32xf32>
    %101 = vector.shape_cast %98 : vector<8x32xf32> to vector<1x8x32xf32>
    tpu.vector_store %arg9[%c0_54, %c0_55, %c0_56], %101 {strides = array<i32>} : memref<1x8x32xf32, #tpu.memory_space<vmem>>, vector<1x8x32xf32>,
    return
  }
  func.func @transform_0(%arg0: i32, %arg1: i32) -> (i32, i32, i32) {
    %c0_i32 = arith.constant 0 : i32
    %c0_i32_0 = arith.constant 0 : i32
    return %arg0, %arg1, %c0_i32 : i32, i32, i32
  }
  func.func @transform_1(%arg0: i32, %arg1: i32) -> (i32, i32, i32) {
    %c0_i32 = arith.constant 0 : i32
    %c0_i32_0 = arith.constant 0 : i32
    %c0_i32_1 = arith.constant 0 : i32
    return %arg0, %c0_i32, %c0_i32_0 : i32, i32, i32
  }
  func.func @transform_2(%arg0: i32, %arg1: i32) -> (i32, i32, i32) {
    %c0_i32 = arith.constant 0 : i32
    %c0_i32_0 = arith.constant 0 : i32
    %c0_i32_1 = arith.constant 0 : i32
    return %arg0, %c0_i32, %c0_i32_0 : i32, i32, i32
  }
  func.func @transform_3(%arg0: i32, %arg1: i32) -> (i32, i32) {
    %c0_i32 = arith.constant 0 : i32
    %c0_i32_0 = arith.constant 0 : i32
    %c0_i32_1 = arith.constant 0 : i32
    return %c0_i32, %c0_i32_0 : i32, i32
  }
  func.func @transform_4(%arg0: i32, %arg1: i32) -> (i32, i32) {
    %c0_i32 = arith.constant 0 : i32
    %c0_i32_0 = arith.constant 0 : i32
    %c0_i32_1 = arith.constant 0 : i32
    return %c0_i32, %c0_i32_0 : i32, i32
  }
  func.func @transform_5(%arg0: i32, %arg1: i32) -> (i32, i32) {
    %c0_i32 = arith.constant 0 : i32
    %c0_i32_0 = arith.constant 0 : i32
    %c0_i32_1 = arith.constant 0 : i32
    return %c0_i32, %c0_i32_0 : i32, i32
  }
  func.func @transform_6(%arg0: i32, %arg1: i32) -> (i32, i32) {
    %c0_i32 = arith.constant 0 : i32
    %c0_i32_0 = arith.constant 0 : i32
    %c0_i32_1 = arith.constant 0 : i32
    return %c0_i32, %c0_i32_0 : i32, i32
  }
  func.func @transform_7(%arg0: i32, %arg1: i32) -> (i32, i32, i32) {
    %c0_i32 = arith.constant 0 : i32
    %c0_i32_0 = arith.constant 0 : i32
    return %arg0, %arg1, %c0_i32 : i32, i32, i32
  }
  func.func @transform_8(%arg0: i32, %arg1: i32) -> (i32, i32, i32, i32) {
    %c0_i32 = arith.constant 0 : i32
    %c0_i32_0 = arith.constant 0 : i32
    %c0_i32_1 = arith.constant 0 : i32
    return %arg0, %c0_i32, %arg1, %c0_i32_0 : i32, i32, i32, i32
  }
}

</mosaic_0001>

<bundles_post_ra>
// kernel: tpu_custom_call.1
= control target key start
LH: loop header
LB: loop body
LE: loop exit
PB: predicated region body
PF: predicated region fallthrough
CT: control target
= control target key end

     0   :  { %s2575_s0 = inlined_call_operand.hbm [shape: f32[2,8,32], index: 0, kind: input, shape index: {}]   ;;  %s2576_s1 = inlined_call_operand.hbm [shape: f32[2,8,32], index: 1, kind: input, shape index: {}]   ;;  %s2577_s2 = inlined_call_operand.hbm [shape: f32[2,8,32], index: 2, kind: input, shape index: {}]   ;;  %s2578_s3 = inlined_call_operand.hbm [shape: f32[32,32], index: 3, kind: input, shape index: {}]   ;;  %s2579_s4 = inlined_call_operand.vmem [shape: f32[1,32], index: 4, kind: input, shape index: {}]   ;;  %s2580_s5 = inlined_call_operand.hbm [shape: f32[32,32], index: 5, kind: input, shape index: {}]   ;;  %s2581_s6 = inlined_call_operand.vmem [shape: f32[1,32], index: 6, kind: input, shape index: {}]   ;;  %s2582_s7 = inlined_call_operand.hbm [shape: f32[2,8,32], index: 7, kind: output, shape index: {0}]   ;;  %s2583_s8 = inlined_call_operand.hbm [shape: f32[2,4,8,8], index: 8, kind: output, shape index: {1}]  }
   0x1   :  { %2604 = sst [smem:[#allocation26_spill]] %s2576_s1 }
   0x2   :  { %2605 = sst [smem:[#allocation27_spill]] %s2578_s3 }
   0x3   :  { %2606 = sst [smem:[#allocation28_spill]] %s2580_s5 }
   0x4   :  { %14 = vsyncpa [#allocation4], 0 }
   0x5   :  { %16 = vsyncpa [#allocation4 + $0x1], 0 }
   0x6   :  { %17 = vsyncpa [#allocation7], 0 }
   0x7   :  { %19 = vsyncpa [#allocation7 + $0x1], 0 }
   0x8   :  { %20 = vsyncpa [#allocation10], 0 }
   0x9   :  { %21 = vsyncpa [#allocation5], 0 }
   0xa   :  { %23 = vsyncpa [#allocation5 + $0x1], 0 }
   0xb   :  { %24 = vsyncpa [#allocation14], 0 }
   0xc   :  { %26 = vsyncpa [#allocation14 + $0x1], 0  ;;  %s2129_s27 = smov 0   ;;  %s2131_s28 = smov 0  }
   0xd   :  { %s2133_s29 = smov 0   ;;  %s2135_s30 = smov 0  }
   0xe   :  { %s2137_s9 = smov 0   ;;  %s2139_s10 = smov 0  }
   0xf LB: > { %2607 = sst [smem:[#allocation20_spill]] %s2043_s27  ;;  %s2160_s11 = sadd.s32 4294967295, %s2063_s10   ;;  %s2063_s10 = sphi %s2139_s10, %s32_s10   ;;  %s2059_s9 = sphi %s2137_s9, %s2645_s9   ;;  %s2055_s30 = sphi %s2135_s30, %s2644_s30   ;;  %s2051_s29 = sphi %s2133_s29, %s2648_s29   ;;  %s2047_s28 = sphi %s2131_s28, %s2647_s28   ;;  %s2043_s27 = sphi %s2129_s27, %s2646_s27  }
  0x10   : > { %2608 = sst [smem:[#allocation21_spill]] %s2059_s9  ;;  %s1523_s12 = sadd.s32 4294967294, %s2063_s10  }
  0x11   : > { %2609 = sst [smem:[#allocation22_spill]] %s2063_s10  ;;  %p66_p0 = scmp.ne.s32.totalorder %s2047_s28, %s2043_s27 }
  0x12   : > { %p2584_p1 = scmp.eq.s32.totalorder %s2160_s11, 0  ;;  %p234_p3 = scmp.eq.s32.totalorder %s1523_s12, 1 }
  0x13   : > { %p1524_p5 = scmp.ge.s32.totalorder %s2063_s10, 1  ;;  %p269_p7 = scmp.lt.s32.totalorder %s2063_s10, 3 }
  0x14   : > { %p2169_p4 = por %p2584_p1, %p66_p0  ;;  %p2174_p6 = por %p234_p3, %p66_p0 }
  0x15   : > { %p2179_p8 = pnand %p1524_p5, %p269_p7  ;;  %s2065_s16 = smov [#allocation9]  }
  0x16   : > { %s2610_s13 = scalar_select %p2169_p4, 1, 0 }
  0x17   : > { %s2611_s14 = scalar_select %p2174_p6, 1, 0 }
  0x18   : > { %s2613_s15 = scalar_select %p2179_p8, 1, 0 }
  0x19   : > { %2612 = sst [smem:[#allocation23_spill]] %s2611_s14  ;;  %s281_s17 = sshll.u32 %s2065_s16, 4  ;;  %s282_s17 = int_to_ptr.vmem [resolvable:$true] %s281_s17 }
  0x1a   : > { %p1687_p9 = pneg %p2179_p8  ;;  %s44_s19 = sadd.s32 1, %s2059_s9 }
  0x1b   : > { %s2615_s3 = sld [smem:[#allocation27_spill]] }
  0x1c   : > { %p2188_p11 = pnand %p1687_p9, %p2584_p1 }
  0x1e   : > { %s2614_s18 = scalar_select %p2188_p11, 1, 0 }
  0x1f   : > { %p2596_p13 = pneg %p2188_p11 }
  0x21   : > { %s1795_s22 = scalar_lea.hbm %s2615_s3, 512 }
  0x22   : > { %p1796_p12 = scmp.ne.s32.totalorder %s2615_s3, %s1795_s22  ;;  %p1802_p5 = scmp.lt.u32.totalorder %s1795_s22, %s2615_s3 }
  0x24   : > { %p1798_p0 = pnand %p2596_p13, %p1796_p12 }
  0x26   : > { %p1799_p3 = pneg %p1798_p0 }
  0x28   : > { %p1804_p7 = pnand %p1802_p5, %p1799_p3 }
  0x2a   : > { %1807 = shalt.err (!%p1804_p7)
}
  0x2b   : > { %s1808_s12 = scalar_lea.vmem %s282_s17, 512  ;;  %p1816_p2 = scmp.lt.s32.totalorder %s282_s17, %s282_s17 }
  0x2c   : > { %p1809_p9 = scmp.ne.s32.totalorder %s282_s17, %s1808_s12  ;;  %p1817_p6 = scmp.lt.s32.totalorder %s1808_s12, %s1808_s12 }
  0x2e   : > { %p1811_p10 = pnand %p1809_p9, %p2596_p13  ;;  %p1818_p4 = por %p1817_p6, %p1816_p2 }
  0x30   : > { %p1812_p1 = pneg %p1811_p10 }
  0x32   : > { %p1819_p8 = pnand %p1818_p4, %p1812_p1 }
  0x34   : > { %1822 = shalt.err (!%p1819_p8)
}
  0x35   : > { %s2587_s16 = smov 128   ;;  %s2588_s20 = smov 8  }
  0x36   : > { %1690 = dma.hbm_to_vmem [thread:$0]  (!%p2188_p11), %s2615_s3, 512, %s282_s17, [#allocation10], %s2587_s16, %s2587_s16, %s2588_s20  }
  0x37   : > { %p46_p1 = scmp.ge.s32.totalorder %s44_s19, 2  ;;  %s53_s23 = sadd.s32 1, %s2051_s29 }
  0x38   : > { %p60_p2 = scmp.ne.s32.totalorder %s2051_s29, %s2047_s28  ;;  %p61_p4 = scmp.eq.s32.totalorder %s2063_s10, 0 }
  0x39   : > { %s2650_s19 = smov (%p46_p1, %s44_s19), 0  ;;  %p2617_p8 = scmp.eq.s32.totalorder %s2160_s11, 1 }
  0x3a   : > { %2616 = sst [smem:[#allocation24_spill]] %s2650_s19  ;;  %p62_p6 = por %p61_p4, %p60_p2 }
  0x3b   : > { %p2226_p10 = por %p2617_p8, %p60_p2  ;;  %s48_s25 = ssub.s32 %s2059_s9, %s2650_s19 }
  0x3c   : > { %p1713_p12 = scmp.lt.s32.totalorder %s2063_s10, 2  ;;  %p51_p0 = scmp.eq.s32.totalorder %s48_s25, 0 }
  0x3d   : > { %s2618_s24 = scalar_select %p2226_p10, 1, 0 }
  0x3e   : > { %s2589_s26 = sand.u32 1, %s2051_s29   ;;  %s2239_s12 = sshll.u32 %s2059_s9, 7 }
  0x3f   : > { %s2236_s17 = sshll.u32 %s2589_s26, 3  ;;  %p2244_p3 = pnand %p1713_p12, %p62_p6 }
  0x40   : > { %s2242_s21 = scalar_select %p51_p0, %s2051_s29, %s53_s23  }
  0x41   : > { %s2620_s22 = scalar_select %p2244_p3, 1, 0 }
  0x42   : > { %2619 = sst [smem:[#allocation25_spill]] %s2242_s21  ;;  %s333_s16 = sand.u32 1, %s2063_s10  }
  0x43   : > { %s2621_s1 = sld [smem:[#allocation26_spill]]  ;;  %s337_s26 = scalar_lea.vmem [#allocation6], %s2236_s17 }
  0x44   : > { %s344_s19 = sshll.u32 %s337_s26, 4  ;;  %s2068_s23 = smov [#allocation11]   ;;  %s2256_s19 = int_to_ptr.vmem [resolvable:$true] %s344_s19 }
  0x45   : > { %s2258_s9 = sshll.u32 %s2068_s23, 4  ;;  %s2260_s21 = scalar_lea.sflag [#allocation7], %s333_s16  ;;  %s298_s9 = int_to_ptr.vmem [resolvable:$true] %s2258_s9 }
  0x46   : > { %p2266_p7 = pneg %p2244_p3 }
  0x48   : > { %s2622_s3 = scalar_select %p2266_p7, 1, 0 }
  0x49   : > { %s2253_s25 = scalar_lea.hbm %s2621_s1, %s2239_s12  ;;  %s1828_s10 = scalar_lea.hbm %s2621_s1, 256 }
  0x4a   : > { %s1823_s14 = scalar_lea.hbm %s2253_s25, 128  ;;  %p1829_p2 = scmp.lt.u32.totalorder %s2253_s25, %s2621_s1 }
  0x4b   : > { %p1824_p5 = scmp.ne.s32.totalorder %s2253_s25, %s1823_s14  ;;  %p1830_p4 = scmp.lt.u32.totalorder %s1828_s10, %s1823_s14 }
  0x4c   : > { %p1832_p8 = scmp.lt.u32.totalorder %s1823_s14, %s2253_s25 }
  0x4d   : > { %p1826_p9 = pnand %p2266_p7, %p1824_p5  ;;  %p1831_p6 = por %p1830_p4, %p1829_p2 }
  0x4f   : > { %p1827_p1 = pneg %p1826_p9  ;;  %p1833_p12 = por %p1832_p8, %p1831_p6 }
  0x51   : > { %p1834_p0 = pnand %p1833_p12, %p1827_p1 }
  0x53   : > { %1837 = shalt.err (!%p1834_p0)
}
  0x54   : > { %s1838_s16 = scalar_lea.vmem %s2256_s19, 128  ;;  %s2069_s20 = smov [#allocation6]  }
  0x55   : > { %p1839_p5 = scmp.ne.s32.totalorder %s2256_s19, %s1838_s16  ;;  %s1843_s26 = sshll.u32 %s2069_s20, 4  ;;  %s1844_s26 = int_to_ptr.vmem [resolvable:$false] %s1843_s26 }
  0x56   : > { %s1845_s27 = scalar_lea.vmem %s1844_s26, 256  ;;  %p1846_p10 = scmp.lt.s32.totalorder %s2256_s19, %s1844_s26 }
  0x57   : > { %p1841_p9 = pnand %p1839_p5, %p2266_p7  ;;  %p1847_p11 = scmp.lt.s32.totalorder %s1845_s27, %s1838_s16 }
  0x59   : > { %p1842_p13 = pneg %p1841_p9  ;;  %p1848_p2 = por %p1847_p11, %p1846_p10 }
  0x5b   : > { %p1849_p4 = pnand %p1848_p2, %p1842_p13 }
  0x5d   : > { %1852 = shalt.err (!%p1849_p4)
}
  0x5e   : > { %1700 = dma.hbm_to_vmem [thread:$0]  (!%p2244_p3), %s2253_s25, 128, %s2256_s19, %s2260_s21  }
  0x5f   : > { %s2623_s5 = sld [smem:[#allocation28_spill]]  ;;  %p2624_p11 = scmp.ne.s32.totalorder %s2614_s18, 0 }
  0x61   : > { %p2625_p13 = pneg %p2624_p11 }
  0x65   : > { %s1853_s23 = scalar_lea.hbm %s2623_s5, 512 }
  0x66   : > { %p1854_p1 = scmp.ne.s32.totalorder %s2623_s5, %s1853_s23  ;;  %p1860_p8 = scmp.lt.u32.totalorder %s1853_s23, %s2623_s5 }
  0x68   : > { %p1856_p10 = pnand %p1854_p1, %p2625_p13 }
  0x6a   : > { %p1857_p6 = pneg %p1856_p10 }
  0x6c   : > { %p1862_p12 = pnand %p1860_p8, %p1857_p6 }
  0x6e   : > { %1865 = shalt.err (!%p1862_p12)
}
  0x6f   : > { %s1866_s19 = scalar_lea.vmem %s298_s9, 512  ;;  %p2626_p5 = pmov %p2625_p13 }
  0x70   : > { %p1867_p0 = scmp.ne.s32.totalorder %s298_s9, %s1866_s19  ;;  %p1874_p4 = scmp.lt.s32.totalorder %s298_s9, %s298_s9 }
  0x71   : > { %p1875_p3 = scmp.lt.s32.totalorder %s1866_s19, %s1866_s19 }
  0x72   : > { %p1869_p9 = pnand %p1867_p0, %p2626_p5 }
  0x73   : > { %p1876_p7 = por %p1875_p3, %p1874_p4 }
  0x74   : > { %p1870_p2 = pneg %p1869_p9 }
  0x76   : > { %p1877_p1 = pnand %p1876_p7, %p1870_p2 }
  0x78   : > { %1880 = shalt.err (!%p1877_p1)
}
  0x79   : > { %s2627_s1 = smov 8   ;;  %s2628_s25 = smov 128  }
  0x7a   : > { %1693 = dma.hbm_to_vmem [thread:$0]  (!%p2624_p11), %s2623_s5, 512, %s298_s9, [#allocation10], %s2628_s25, %s2628_s25, %s2627_s1  }
  0x7b   : > { %s2318_s20 = scalar_lea.hbm %s2575_s0, %s2239_s12  ;;  %s318_s18 = scalar_lea.vmem [#allocation3], %s2236_s17 }
  0x7c   : > { %s326_s16 = sshll.u32 %s318_s18, 4  ;;  %s2327_s27 = scalar_lea.hbm %s2577_s2, %s2239_s12  ;;  %s2321_s16 = int_to_ptr.vmem [resolvable:$true] %s326_s16 }
  0x7d   : > { %s2629_s10 = sand.u32 1, %s2051_s29   ;;  %s1881_s1 = scalar_lea.hbm %s2318_s20, 128 }
  0x7e   : > { %s315_s9 = scalar_lea.sflag [#allocation4], %s2629_s10  ;;  %p1882_p3 = scmp.ne.s32.totalorder %s2318_s20, %s1881_s1 }
  0x7f   : > { %p2630_p7 = scmp.ne.s32.totalorder %s2622_s3, 0  ;;  %s1886_s23 = scalar_lea.hbm %s2575_s0, 256 }
  0x80   : > { %p1887_p10 = scmp.lt.u32.totalorder %s2318_s20, %s2575_s0  ;;  %p1888_p6 = scmp.lt.u32.totalorder %s1886_s23, %s1881_s1 }
  0x81   : > { %p1884_p11 = pnand %p1882_p3, %p2630_p7  ;;  %p1890_p12 = scmp.lt.u32.totalorder %s1881_s1, %s2318_s20 }
  0x82   : > { %p1889_p8 = por %p1888_p6, %p1887_p10 }
  0x83   : > { %p1885_p13 = pneg %p1884_p11 }
  0x84   : > { %p1891_p0 = por %p1890_p12, %p1889_p8 }
  0x86   : > { %p1892_p5 = pnand %p1891_p0, %p1885_p13 }
  0x88   : > { %1895 = shalt.err (!%p1892_p5)
}
  0x89   : > { %s1896_s12 = scalar_lea.vmem %s2321_s16, 128  ;;  %s2070_s26 = smov [#allocation3]  }
  0x8a   : > { %p1897_p9 = scmp.ne.s32.totalorder %s2321_s16, %s1896_s12  ;;  %s1901_s19 = sshll.u32 %s2070_s26, 4  ;;  %s1902_s19 = int_to_ptr.vmem [resolvable:$false] %s1901_s19 }
  0x8b   : > { %s1903_s5 = scalar_lea.vmem %s1902_s19, 256  ;;  %p1904_p1 = scmp.lt.s32.totalorder %s2321_s16, %s1902_s19 }
  0x8c   : > { %p1899_p2 = pnand %p1897_p9, %p2630_p7  ;;  %p1905_p3 = scmp.lt.s32.totalorder %s1903_s5, %s1896_s12 }
  0x8e   : > { %p1900_p4 = pneg %p1899_p2  ;;  %p1906_p11 = por %p1905_p3, %p1904_p1 }
  0x90   : > { %p1907_p10 = pnand %p1906_p11, %p1900_p4 }
  0x92   : > { %1910 = shalt.err (!%p1907_p10)
}
  0x93   : > { %p2631_p13 = scmp.ne.s32.totalorder %s2620_s22, 0  ;;  %s355_s10 = scalar_lea.vmem [#allocation8], %s2236_s17 }
  0x94   : > { %s362_s1 = sshll.u32 %s355_s10, 4  ;;  %s1911_s25 = scalar_lea.hbm %s2327_s27, 128  ;;  %s363_s1 = int_to_ptr.vmem [resolvable:$true] %s362_s1 }
  0x95   : > { %1697 = dma.hbm_to_vmem [thread:$0]  (!%p2631_p13), %s2318_s20, 128, %s2321_s16, %s315_s9  }
  0x96   : > { %p1912_p6 = scmp.ne.s32.totalorder %s2327_s27, %s1911_s25  ;;  %s1916_s18 = scalar_lea.hbm %s2577_s2, 256 }
  0x97   : > { %p1917_p0 = scmp.lt.u32.totalorder %s2327_s27, %s2577_s2  ;;  %p1918_p5 = scmp.lt.u32.totalorder %s1916_s18, %s1911_s25 }
  0x98   : > { %p1914_p8 = pnand %p1912_p6, %p2630_p7  ;;  %p1920_p2 = scmp.lt.u32.totalorder %s1911_s25, %s2327_s27 }
  0x99   : > { %p1919_p9 = por %p1918_p5, %p1917_p0 }
  0x9a   : > { %p1915_p12 = pneg %p1914_p8 }
  0x9b   : > { %p1921_p4 = por %p1920_p2, %p1919_p9 }
  0x9d   : > { %p1922_p1 = pnand %p1921_p4, %p1915_p12 }
  0x9f   : > { %1925 = shalt.err (!%p1922_p1)
}
  0xa0   : > { %s1926_s17 = scalar_lea.vmem %s363_s1, 128  ;;  %s2071_s20 = smov [#allocation8]  }
  0xa1   : > { %p1927_p3 = scmp.ne.s32.totalorder %s363_s1, %s1926_s17  ;;  %s1931_s16 = sshll.u32 %s2071_s20, 4  ;;  %s1932_s16 = int_to_ptr.vmem [resolvable:$false] %s1931_s16 }
  0xa2   : > { %s1933_s9 = scalar_lea.vmem %s1932_s16, 256  ;;  %p1934_p6 = scmp.lt.s32.totalorder %s363_s1, %s1932_s16 }
  0xa3   : > { %p1929_p11 = pnand %p1927_p3, %p2630_p7  ;;  %p1935_p8 = scmp.lt.s32.totalorder %s1933_s9, %s1926_s17 }
  0xa5   : > { %p1930_p10 = pneg %p1929_p11  ;;  %p1936_p13 = por %p1935_p8, %p1934_p6 }
  0xa7   : > { %p1937_p0 = pnand %p1936_p13, %p1930_p10 }
  0xa9   : > { %1940 = shalt.err (!%p1937_p0)
}
  0xaa   : > { %p2632_p5 = scmp.ne.s32.totalorder %s2620_s22, 0  ;;  %p2633_p12 = scmp.ne.s32.totalorder %s2613_s15, 0 }
  0xab   : > { %s2374_s3 = sand.u32 (!%p2633_p12), 1, %s2047_s28   ;;  %p2634_p7 = scmp.ne.s32.totalorder (!%p2633_p12), %s2610_s13, 0 }
  0xac   : > { %1703 = dma.hbm_to_vmem [thread:$0]  (!%p2632_p5), %s2327_s27, 128, %s363_s1, %s2260_s21  }
  0xad   : > { %371 = sbr.rel (%p2633_p12) target bundleno = 2097 (0x831), region = 48  ;;  %s2377_s19 = sshll.u32 (!%p2633_p12), %s2374_s3, 3 }
  0xae   : > { %s374_s5 = scalar_lea.sflag (!%p2633_p12), [#allocation4], %s2374_s3  ;;  %s377_s10 = scalar_lea.vmem (!%p2633_p12), [#allocation3], %s2377_s19 }
  0xb4   : > { %2022 = dma.done.wait (%p2634_p7), %s374_s5, 128  }
  0xb5   : > { %2024 = vsyncadd (%p2634_p7), %s374_s5, 4294967168  ;;  %s382_s15 = sand.u32 1, %s2160_s11   ;;  %s386_s22 = scalar_lea.vmem [#allocation6], %s2377_s19 }
  0xb6   : > { %s383_s21 = scalar_lea.sflag [#allocation7], %s382_s15 }
  0xb7   : > { %2026 = dma.done.wait (%p2634_p7), %s383_s21, 256  }
  0xb8   : > { %2028 = vsyncadd (%p2634_p7), %s383_s21, 4294967040  ;;  %s395_s27 = scalar_lea.vmem [#allocation8], %s2377_s19  ;;  %p2635_p13 = scmp.eq.s32.totalorder %s2160_s11, 0 }
  0xba   : > { %2030 = dma.done.wait (%p2635_p13), [#allocation10], 1024   ;;  %p2636_p9 = pmov %p2635_p13 }
  0xbb   : > { %v2072_v0 = vmov 0.0|0.0   ;;  %vm2073_vm0 = vmmov 0   ;;  %v2074_v1 = vmov 0.0   ;;  %v452_v2 = vld [vmem:[#allocation9] sm:$0xff]  ;;  %v453_v3 = vld [vmem:[#allocation9 + $0x8] sm:$0xff]  ;;  %v454_v4 = vld [vmem:[#allocation9 + $0x10] sm:$0xff] }
  0xbc   : > { %2032 = vsyncadd (%p2636_p9), [#allocation10], 4294966272  ;;  %1657 = vmatprep.subr.bf16.mxu0 %v2072_v0  ;;  %1603 = vmatprep.mubr.msk.f32.mxu0 %vm2073_vm0, %v2074_v1  ;;  %v1658_v5 = vpack.c.bf16 %v453_v3, %v452_v2  ;;  %v455_v6 = vld [vmem:[#allocation9 + $0x18] sm:$0xff]  ;;  %vm463_vm1 = vcmask 261120   ;;  %v538_v9 = vld [vmem:[%s386_s22] sm:$0xff]  ;;  %s2075_s11 = smov 120  }
  0xbd   : > { %1606 = vmatprep.subr.mxu1 %v2074_v1  ;;  %1608 = vmatprep.mubr.msk.f32.mxu1 %vm2073_vm0, %v2074_v1  ;;  %v1661_v7 = vpack.c.bf16 %v455_v6, %v454_v4  ;;  %v451_v8 = vld [vmem:[%s377_s10] sm:$0xff]  ;;  %vm540_vm2 = vcmask 64512   ;;  %v1542_v10 = vld [vmem:[%s2579_s4] ss:$0 sm:$0xff]  ;;  %s2076_s25 = smov 112   ;;  %s2077_s14 = smov 104  }
  0xbe   : > { %1659 = vmatpush3.bf16.msra.mxu0 %v1658_v5  ;;  %705 = vrot.lane.b32.xlu1 %v538_v9, %s2075_s11  ;;  %v2424_v23 = vld [vmem:[%s395_s27] sm:$0xff]  ;;  %s1541_s23 = sshll.u32 %s2374_s3, 5  ;;  %s2078_s12 = smov 8   ;;  %vm875_vm3 = vcmask 130112   ;;  %vm1048_vm4 = vcmask 195712   ;;  %vm1221_vm5 = vcmask 261312  }
  0xbf   : > { %1660 = vmatprep.subr.bf16.mxu0 %v2072_v0  ;;  %1607 = vmatpush3.xpose.msk.msra.mxu1 %vm540_vm2, %v538_v9  ;;  %s2440_s18 = scalar_lea.vmem [#allocation13], %s1541_s23  ;;  %s2079_s26 = smov 16  }
  0xc0   : > { %1611 = vmatprep.subr.mxu1 %v2074_v1  ;;  %s2080_s17 = smov 24   ;;  %s1568_s20 = sshll.u32 %s2055_s30, 9 }
  0xc1   : > { %s1343_s16 = sshll.u32 %s2440_s18, 4  ;;  %s2488_s10 = scalar_lea.hbm %s2583_s8, %s1568_s20  ;;  %s2490_s16 = int_to_ptr.vmem [resolvable:$true] %s1343_s16 }
  0xc2   : > { %1662 = vmatpush3.bf16.msra.mxu0 %v1661_v7  ;;  %s1315_s15 = scalar_lea.sflag [#allocation14], %s2374_s3  ;;  %s1941_s21 = scalar_lea.vmem %s2490_s16, 512 }
  0xc3   : > { %1626 = vmatprep.subr.mxu0 %v2074_v1  ;;  %p1942_p2 = scmp.ne.s32.totalorder %s2490_s16, %s1941_s21  ;;  %p2637_p4 = scmp.ne.s32.totalorder %s2618_s24, 0 }
  0xc4   : > { %s2081_s22 = smov [#allocation13]  }
  0xc5   : > { %1604 = vmatmul.mubr.msk.f32.vlgmr.msra.gmra.mrb[0].mxu0 %vm463_vm1, %v451_v8  ;;  %p1943_p1 = pnand %p1942_p2, %p2637_p4  ;;  %s1945_s27 = sshll.u32 %s2081_s22, 4  ;;  %s1946_s27 = int_to_ptr.vmem [resolvable:$false] %s1945_s27 }
  0xc6   : > { %1628 = vmatprep.mubr.msk.f32.mxu0 %vm2073_vm0, %v2074_v1  ;;  %p1948_p11 = scmp.lt.s32.totalorder %s2490_s16, %s1946_s27 }
  0xc7   : > { %p1944_p3 = pneg %p1943_p1 }
 0x130   : > { %v706_v24 = vpop.permute.xlu1 %705 }
 0x198   : > { %v533_v11 = vpop.f32.mrb[0].mxu0 }
 0x199   : > { %v534_v12 = vadd.f32 %v1542_v10, %v533_v11  ;;  %v1605_v13 = vpop.f32.mrb[1].mxu0  ;;  %v1225_v10 = vld [vmem:[#allocation11 + $0x8] sm:$0xff] }
 0x19a   : > { %v1227_v13 = vld [vmem:[#allocation11 + $0x18] sm:$0xff] }
 0x19b   : > { %v537_v14 = vmul.f32 0.35355338, %v534_v12  ;;  %v1226_v12 = vld [vmem:[#allocation11 + $0x10] sm:$0xff] }
 0x19d   : > { %703 = vrot.lane.b32.xlu1 %v537_v14, %s2075_s11  ;;  %1609 = vmatmul.mubr.msk.f32.vlgmr.msra.gmra.mrb[0].mxu1 %vm540_vm2, %v537_v14 }
 0x19e   : > { %1613 = vmatprep.mubr.msk.f32.mxu1 %vm2073_vm0, %v2074_v1  ;;  %1612 = vmatpush3.msra.mxu1 %v2424_v23 }
 0x19f   : > { %1616 = vmatprep.subr.mxu1 %v2074_v1 }
 0x1a1   : > { %877 = vrot.lane.b32.xlu1 %v537_v14, %s2076_s25 }
 0x1a5   : > { %1052 = vrot.lane.b32.xlu1 %v538_v9, %s2077_s14 }
 0x1a9   : > { %1050 = vrot.lane.b32.xlu1 %v537_v14, %s2077_s14  ;;  %v1667_v14 = vpack.c.bf16 %v1227_v13, %v1226_v12 }
 0x20f   : > { %v704_v25 = vpop.permute.xlu1 %703 }
 0x213   : > { %v878_v26 = vpop.permute.xlu1 %877 }
 0x217   : > { %v1053_v29 = vpop.permute.xlu1 %1052 }
 0x21b   : > { %v1051_v31 = vpop.permute.xlu1 %1050 }
 0x270   : > { %v613_v15 = vpop.f32.mrb[0].mxu1 }
 0x271   : > { %v1610_v16 = vpop.f32.mrb[1].mxu1  ;;  %v617_v17 = vsel %vm540_vm2, %v613_v15, -inf }
 0x272   : > { %618 = vmax.xlane.f32.xlu0 %v617_v17 }
 0x2ff   : > { %v619_v18 = vpop.xlane.xlu0 %618 }
 0x300   : > { %v620_v19 = vsub.f32 %v613_v15, %v619_v18 }
 0x302   : > { %v621_v20 = vmul.f32 1.442695, %v620_v19 }
 0x304   : > { %1779 = vpow2.f32 %v621_v20 }
 0x30e   : > { %v1780_v21 = vpop.eup %1779 }
 0x30f   : > { %v623_v22 = vsel %vm540_vm2, %v1780_v21, 0.0 }
 0x310   : > { %624 = vadd.xlane.f32.xlu0 %v623_v22 }
 0x326   : > { %879 = vrot.lane.b32.xlu0 %v538_v9, %s2076_s25  ;;  %v1224_v9 = vld [vmem:[#allocation11] sm:$0xff] }
 0x327   : > { %v1664_v11 = vpack.c.bf16 %v1225_v10, %v1224_v9 }
 0x39d   : > { %v625_v27 = vpop.xlane.xlu0 %624 }
 0x39e   : > { %1781 = vrcp.f32 %v625_v27 }
 0x3a1   : > { %v880_v28 = vpop.permute.xlu0 %879 }
 0x3a2   : > { %1627 = vmatpush3.xpose.msk.msra.mxu0 %vm540_vm2, %v880_v28 }
 0x3a3   : > { %1636 = vmatprep.subr.mxu0 %v2074_v1 }
 0x3a5   : > { %1629 = vmatmul.mubr.msk.f32.vlgmr.msra.gmra.mrb[2].mxu0 %vm540_vm2, %v878_v26 }
 0x3a6   : > { %1637 = vmatpush3.xpose.msk.msra.mxu0 %vm540_vm2, %v1053_v29  ;;  %1638 = vmatprep.mubr.msk.f32.mxu0 %vm2073_vm0, %v2074_v1 }
 0x3a7   : > { %1663 = vmatprep.subr.bf16.mxu0 %v2072_v0 }
 0x3a8   : > { %v1782_v30 = vpop.eup %1781 }
 0x3a9   : > { %v627_v32 = vmul.f32 %v1782_v30, %v1780_v21  ;;  %1639 = vmatmul.mubr.msk.f32.vlgmr.msra.gmra.mrb[4].mxu0 %vm540_vm2, %v1051_v31 }
 0x3aa   : > { %1654 = vmatprep.mubr.msk.f32.mxu0 %vm2073_vm0, %v2074_v1  ;;  %1665 = vmatpush3.bf16.msra.mxu0 %v1664_v11 }
 0x3ab   : > { %628 = vst.msk [vmem:[%s2440_s18] sm:$0xff] %vm540_vm2, %v627_v32  ;;  %1614 = vmatmul.mubr.msk.f32.vlgmr.msra.gmra.mrb[2].mxu1 %vm540_vm2, %v627_v32  ;;  %1666 = vmatprep.subr.bf16.mxu0 %v2072_v0 }
 0x3ac   : > { %1617 = vmatpush3.xpose.msk.msra.mxu1 %vm540_vm2, %v706_v24  ;;  %1618 = vmatprep.mubr.msk.f32.mxu1 %vm2073_vm0, %v2074_v1 }
 0x3ad   : > { %1621 = vmatprep.subr.mxu1 %v2074_v1 }
 0x3ae   : > { %1668 = vmatpush3.bf16.msra.mxu0 %v1667_v14 }
 0x3af   : > { %1619 = vmatmul.mubr.msk.f32.vlgmr.msra.gmra.mrb[4].mxu1 %vm540_vm2, %v704_v25 }
 0x3b0   : > { %1623 = vmatprep.mubr.msk.f32.mxu1 %vm2073_vm0, %v2074_v1 }
 0x478   : > { %v951_v33 = vpop.f32.mrb[2].mxu0 }
 0x479   : > { %v1630_v34 = vpop.f32.mrb[3].mxu0  ;;  %v955_v35 = vsel %vm540_vm2, %v951_v33, -inf }
 0x47a   : > { %956 = vmax.xlane.f32.xlu0 %v955_v35 }
 0x47c   : > { %v1124_v36 = vpop.f32.mrb[4].mxu0 }
 0x47d   : > { %v1640_v37 = vpop.f32.mrb[5].mxu0  ;;  %v1128_v43 = vsel %vm540_vm2, %v1124_v36, -inf }
 0x47e   : > { %v698_v38 = vpop.f32.mrb[2].mxu1 }
 0x47f   : > { %702 = vst.msk [vmem:[#allocation2] sm:$0xff] %vm540_vm2, %v698_v38  ;;  %v1615_v39 = vpop.f32.mrb[3].mxu1 }
 0x482   : > { %v777_v40 = vpop.f32.mrb[4].mxu1 }
 0x483   : > { %v1620_v41 = vpop.f32.mrb[5].mxu1  ;;  %v781_v42 = vsel %vm540_vm2, %v777_v40, -inf }
 0x484   : > { %782 = vmax.xlane.f32.xlu1 %v781_v42 }
 0x488   : > { %1129 = vmax.xlane.f32.xlu1 %v1128_v43 }
 0x507   : > { %v957_v44 = vpop.xlane.xlu0 %956 }
 0x508   : > { %v958_v45 = vsub.f32 %v951_v33, %v957_v44 }
 0x50a   : > { %v959_v46 = vmul.f32 1.442695, %v958_v45 }
 0x50c   : > { %1783 = vpow2.f32 %v959_v46 }
 0x511   : > { %v783_v47 = vpop.xlane.xlu1 %782 }
 0x512   : > { %v784_v55 = vsub.f32 %v777_v40, %v783_v47 }
 0x514   : > { %v785_v56 = vmul.f32 1.442695, %v784_v55 }
 0x515   : > { %v1130_v48 = vpop.xlane.xlu1 %1129 }
 0x516   : > { %v1784_v49 = vpop.eup %1783  ;;  %v1131_v50 = vsub.f32 %v1124_v36, %v1130_v48 }
 0x517   : > { %v961_v51 = vsel %vm540_vm2, %v1784_v49, 0.0 }
 0x518   : > { %v1132_v52 = vmul.f32 1.442695, %v1131_v50  ;;  %962 = vadd.xlane.f32.xlu0 %v961_v51 }
 0x51a   : > { %1785 = vpow2.f32 %v1132_v52 }
 0x51b   : > { %1787 = vpow2.f32 %v785_v56 }
 0x524   : > { %v1786_v53 = vpop.eup %1785 }
 0x525   : > { %v1134_v54 = vsel %vm540_vm2, %v1786_v53, 0.0  ;;  %v1788_v57 = vpop.eup %1787 }
 0x526   : > { %1135 = vadd.xlane.f32.xlu1 %v1134_v54  ;;  %v787_v58 = vsel %vm540_vm2, %v1788_v57, 0.0 }
 0x52e   : > { %795 = vrot.lane.b32.xlu0 %v2424_v23, %s2075_s11  ;;  %s1947_s11 = scalar_lea.vmem %s1946_s27, 1024 }
 0x52f   : > { %p1949_p10 = scmp.lt.s32.totalorder %s1947_s11, %s1941_s21 }
 0x531   : > { %p1950_p6 = por %p1949_p10, %p1948_p11 }
 0x533   : > { %p1951_p8 = pnand %p1950_p6, %p1944_p3 }
 0x537   : > { %968 = vrot.lane.b32.xlu1 %v2424_v23, %s2076_s25 }
 0x55b   : > { %788 = vadd.xlane.f32.xlu1 %v787_v58 }
 0x56c   : > { %1141 = vrot.lane.b32.xlu1 %v2424_v23, %s2077_s14 }
 0x5a5   : > { %v963_v59 = vpop.xlane.xlu0 %962 }
 0x5a6   : > { %1789 = vrcp.f32 %v963_v59 }
 0x5a9   : > { %v796_v60 = vpop.permute.xlu0 %795 }
 0x5aa   : > { %1622 = vmatpush3.msra.mxu1 %v796_v60 }
 0x5ab   : > { %1631 = vmatprep.subr.mxu1 %v2074_v1 }
 0x5b0   : > { %v1790_v61 = vpop.eup %1789 }
 0x5b1   : > { %v965_v62 = vmul.f32 %v1790_v61, %v1784_v49 }
 0x5b3   : > { %1553 = vst.msk [vmem:[%s2440_s18 + $0x10] sm:$0xff] %vm540_vm2, %v965_v62  ;;  %v1136_v63 = vpop.xlane.xlu1 %1135 }
 0x5b4   : > { %1791 = vrcp.f32 %v1136_v63 }
 0x5b7   : > { %v969_v4 = vpop.permute.xlu1 %968 }
 0x5be   : > { %v1792_v2 = vpop.eup %1791 }
 0x5bf   : > { %v1138_v3 = vmul.f32 %v1792_v2, %v1786_v53 }
 0x5c1   : > { %1557 = vst.msk [vmem:[%s2440_s18 + $0x18] sm:$0xff] %vm540_vm2, %v1138_v3 }
 0x5e8   : > { %v789_v5 = vpop.xlane.xlu1 %788 }
 0x5e9   : > { %1793 = vrcp.f32 %v789_v5 }
 0x5ec   : > { %v1142_v8 = vpop.permute.xlu1 %1141 }
 0x5f3   : > { %v1794_v6 = vpop.eup %1793 }
 0x5f4   : > { %v791_v7 = vmul.f32 %v1794_v6, %v1788_v57 }
 0x5f6   : > { %1549 = vst.msk [vmem:[%s2440_s18 + $0x8] sm:$0xff] %vm540_vm2, %v791_v7  ;;  %1624 = vmatmul.mubr.msk.f32.vlgmr.msra.gmra.mrb[6].mxu1 %vm540_vm2, %v791_v7 }
 0x5f7   : > { %1632 = vmatpush3.msra.mxu1 %v969_v4  ;;  %1633 = vmatprep.mubr.msk.f32.mxu1 %vm2073_vm0, %v2074_v1 }
 0x5f8   : > { %1641 = vmatprep.subr.mxu1 %v2074_v1 }
 0x5fa   : > { %1634 = vmatmul.mubr.msk.f32.vlgmr.msra.gmra.mrb[8].mxu1 %vm540_vm2, %v965_v62 }
 0x5fb   : > { %1642 = vmatpush3.msra.mxu1 %v1142_v8  ;;  %1643 = vmatprep.mubr.msk.f32.mxu1 %vm2073_vm0, %v2074_v1 }
 0x5fe   : > { %1644 = vmatmul.mubr.msk.f32.vlgmr.msra.gmra.mrb[10].mxu1 %vm540_vm2, %v1138_v3 }
 0x6c9   : > { %v867_v15 = vpop.f32.mrb[6].mxu1 }
 0x6ca   : > { %872 = vrot.lane.b32.xlu0 %v867_v15, %s2078_s12  ;;  %v1625_v16 = vpop.f32.mrb[7].mxu1 }
 0x6cd   : > { %v1040_v17 = vpop.f32.mrb[8].mxu1 }
 0x6ce   : > { %1045 = vrot.lane.b32.xlu1 %v1040_v17, %s2079_s26  ;;  %v1635_v1 = vpop.f32.mrb[9].mxu1 }
 0x6d1   : > { %v1213_v18 = vpop.f32.mrb[10].mxu1 }
 0x6d2   : > { %1218 = vrot.lane.b32.xlu0 %v1213_v18, %s2080_s17  ;;  %v1645_v19 = vpop.f32.mrb[11].mxu1 }
 0x73c   : > { %v873_v20 = vpop.permute.xlu0 %872 }
 0x73d   : > { %876 = vst.msk [vmem:[#allocation2] sm:$0xff] %vm875_vm3, %v873_v20 }
 0x740   : > { %v1046_v0 = vpop.permute.xlu1 %1045 }
 0x741   : > { %1049 = vst.msk [vmem:[#allocation2] sm:$0xff] %vm1048_vm4, %v1046_v0 }
 0x744   : > { %v1219_v21 = vpop.permute.xlu0 %1218 }
 0x745   : > { %1222 = vst.msk [vmem:[#allocation2] sm:$0xff] %vm1221_vm5, %v1219_v21 }
 0x74c   : > { %v1223_v22 = vld [vmem:[#allocation2] sm:$0xff] }
 0x74d   : > { %1655 = vmatmul.mubr.msk.f32.vlgmr.msra.gmra.mrb[6].mxu0 %vm463_vm1, %v1223_v22 }
 0x74e   : > { %1954 = shalt.err (!%p1951_p8)
}
 0x74f   : > { %s1955_s13 = scalar_lea.hbm %s2488_s10, 512  ;;  %s1959_s14 = scalar_lea.hbm %s2583_s8, 1024 }
 0x750   : > { %p1956_p0 = scmp.ne.s32.totalorder %s2488_s10, %s1955_s13  ;;  %p1960_p7 = scmp.lt.u32.totalorder %s2488_s10, %s2583_s8 }
 0x751   : > { %p1961_p13 = scmp.lt.u32.totalorder %s1959_s14, %s1955_s13  ;;  %p1963_p2 = scmp.lt.u32.totalorder %s1955_s13, %s2488_s10 }
 0x752   : > { %p1957_p5 = pnand %p1956_p0, %p2637_p4 }
 0x753   : > { %p1962_p9 = por %p1961_p13, %p1960_p7 }
 0x754   : > { %p1958_p12 = pneg %p1957_p5 }
 0x755   : > { %p1964_p1 = por %p1963_p2, %p1962_p9 }
 0x757   : > { %p1965_p3 = pnand %p1964_p1, %p1958_p12 }
 0x759   : > { %1968 = shalt.err (!%p1965_p3)
}
 0x75a   : > { %s2082_s26 = smov 128   ;;  %v1559_v23 = vld [vmem:[%s2581_s6] ss:$0 sm:$0xff]  ;;  %s1563_s9 = sshll.u32 %s2055_s30, 7 }
 0x75b   : > { %1684 = dma.vmem_to_hbm [thread:$0]  (%p2637_p4), %s2490_s16, 512, %s2488_s10, %s1315_s15, %s2082_s26, %s2082_s26, %s2078_s12  }
 0x75c   : > { %s443_s5 = scalar_lea.vmem [#allocation12], %s2377_s19  ;;  %s2525_s11 = scalar_lea.hbm %s2582_s7, %s1563_s9 }
 0x75d   : > { %s1329_s21 = sshll.u32 %s443_s5, 4  ;;  %s1310_s12 = scalar_lea.sflag [#allocation5], %s2374_s3  ;;  %s2527_s21 = int_to_ptr.vmem [resolvable:$true] %s1329_s21 }
 0x75e   : > { %s1969_s16 = scalar_lea.vmem %s2527_s21, 128  ;;  %s2083_s30 = smov [#allocation12]  }
 0x75f   : > { %p1970_p11 = scmp.ne.s32.totalorder %s2527_s21, %s1969_s16  ;;  %s1973_s19 = sshll.u32 %s2083_s30, 4  ;;  %s1974_s19 = int_to_ptr.vmem [resolvable:$false] %s1973_s19 }
 0x760   : > { %s1975_s10 = scalar_lea.vmem %s1974_s19, 256  ;;  %p1976_p8 = scmp.lt.s32.totalorder %s2527_s21, %s1974_s19 }
 0x761   : > { %p1971_p10 = pnand %p1970_p11, %p2637_p4  ;;  %p1977_p0 = scmp.lt.s32.totalorder %s1975_s10, %s1969_s16 }
 0x763   : > { %p1972_p6 = pneg %p1971_p10  ;;  %p1978_p5 = por %p1977_p0, %p1976_p8 }
 0x765   : > { %p1979_p12 = pnand %p1978_p5, %p1972_p6 }
 0x820   : > { %v1304_v24 = vpop.f32.mrb[6].mxu0 }
 0x821   : > { %v1305_v25 = vadd.f32 %v1559_v23, %v1304_v24  ;;  %v1656_v26 = vpop.f32.mrb[7].mxu0 }
 0x823   : > { %1308 = vst.msk [vmem:[%s443_s5] sm:$0xff] %vm463_vm1, %v1305_v25 }
 0x824   : > { %1982 = shalt.err (!%p1979_p12)
}
 0x825   : > { %s1983_s3 = scalar_lea.hbm %s2525_s11, 128  ;;  %s1987_s1 = scalar_lea.hbm %s2582_s7, 256 }
 0x826   : > { %p1984_p7 = scmp.ne.s32.totalorder %s2525_s11, %s1983_s3  ;;  %p1988_p2 = scmp.lt.u32.totalorder %s2525_s11, %s2582_s7 }
 0x827   : > { %p1989_p1 = scmp.lt.u32.totalorder %s1987_s1, %s1983_s3  ;;  %p1991_p11 = scmp.lt.u32.totalorder %s1983_s3, %s2525_s11 }
 0x828   : > { %p1985_p13 = pnand %p1984_p7, %p2637_p4 }
 0x829   : > { %p1990_p3 = por %p1989_p1, %p1988_p2 }
 0x82a   : > { %p1986_p9 = pneg %p1985_p13 }
 0x82b   : > { %p1992_p10 = por %p1991_p11, %p1990_p3 }
 0x82d   : > { %p1993_p6 = pnand %p1992_p10, %p1986_p9 }
 0x82f   : > { %1996 = shalt.err (!%p1993_p6)
}
 0x830   : > { %1683 = dma.vmem_to_hbm [thread:$0]  (%p2637_p4), %s2527_s21, 128, %s2525_s11, %s1310_s12  }
 0x831 PF: > { %s2638_s23 = sld [smem:[#allocation20_spill]]  ;;  %s2639_s18 = sld [smem:[#allocation23_spill]] }
 0x832   : > { %s2640_s26 = sld [smem:[#allocation22_spill]] }
 0x837   : > { %s1358_s17 = sand.u32 1, %s2638_s23   ;;  %p2641_p8 = scmp.ne.s32.totalorder %s2639_s18, 0 }
 0x838   : > { %p2642_p0 = scmp.ge.s32.totalorder %s2640_s26, 2  ;;  %s1359_s20 = scalar_lea.sflag [#allocation5], %s1358_s17 }
 0x83a   : > { %p1705_p5 = pnand %p2642_p0, %p2641_p8 }
 0x83c   : > { %2034 = dma.done.wait (!%p1705_p5), %s1359_s20, 128  }
 0x83d   : > { %2036 = vsyncadd (!%p1705_p5), %s1359_s20, 4294967168  ;;  %s1368_s9 = scalar_lea.sflag [#allocation14], %s1358_s17 }
 0x83e   : > { %2038 = dma.done.wait (!%p1705_p5), %s1368_s9, 512  }
 0x83f   : > { %2040 = vsyncadd (!%p1705_p5), %s1368_s9, 4294966784  ;;  %s32_s10 = sadd.s32 1, %s2640_s26   ;;  %s2643_s24 = sld [smem:[#allocation25_spill]] }
 0x840   : > { %p29_p12 = scmp.ge.s32.totalorder %s32_s10, 4   ;;  %s2644_s30 = sld [smem:[#allocation21_spill]] }
 0x841   : > { %s2645_s9 = sld [smem:[#allocation24_spill]]  ;;  %s2646_s27 = smov %s2047_s28 }
 0x842   : > { %s2647_s28 = smov %s2051_s29  ;;  %31 = sbr.rel (!%p29_p12) target bundleno = 15 (0xf), region = 145 }
 0x845   : > { %s2648_s29 = smov %s2643_s24 }
 0x849   :  { %1373 = vsyncpa [#allocation4], 1 }
 0x84a   :  { %1375 = vsyncpa [#allocation4 + $0x1], 1 }
 0x84b   :  { %1376 = vsyncpa [#allocation7], 1 }
 0x84c   :  { %1378 = vsyncpa [#allocation7 + $0x1], 1 }
 0x84d   :  { %1379 = vsyncpa [#allocation10], 1 }
 0x84e   :  { %1380 = vsyncpa [#allocation5], 1 }
 0x84f   :  { %1382 = vsyncpa [#allocation5 + $0x1], 1 }
 0x850   :  { %1383 = vsyncpa [#allocation14], 1 }
 0x851   :  { %1385 = vsyncpa [#allocation14 + $0x1], 1 }

// kernel: tpu_custom_call.1
= control target key start
LH: loop header
LB: loop body
LE: loop exit
PB: predicated region body
PF: predicated region fallthrough
CT: control target
= control target key end

     0   :  { %s2575_s0 = inlined_call_operand.hbm [shape: f32[2,8,32], index: 0, kind: input, shape index: {}]   ;;  %s2576_s1 = inlined_call_operand.hbm [shape: f32[2,8,32], index: 1, kind: input, shape index: {}]   ;;  %s2577_s2 = inlined_call_operand.hbm [shape: f32[2,8,32], index: 2, kind: input, shape index: {}]   ;;  %s2578_s3 = inlined_call_operand.hbm [shape: f32[32,32], index: 3, kind: input, shape index: {}]   ;;  %s2579_s4 = inlined_call_operand.vmem [shape: f32[1,32], index: 4, kind: input, shape index: {}]   ;;  %s2580_s5 = inlined_call_operand.hbm [shape: f32[32,32], index: 5, kind: input, shape index: {}]   ;;  %s2581_s6 = inlined_call_operand.vmem [shape: f32[1,32], index: 6, kind: input, shape index: {}]   ;;  %s2582_s7 = inlined_call_operand.hbm [shape: f32[2,8,32], index: 7, kind: output, shape index: {0}]   ;;  %s2583_s8 = inlined_call_operand.hbm [shape: f32[2,4,8,8], index: 8, kind: output, shape index: {1}]  }
   0x1   :  { %2604 = sst [smem:[#allocation26_spill]] %s2576_s1 }
   0x2   :  { %2605 = sst [smem:[#allocation27_spill]] %s2578_s3 }
   0x3   :  { %2606 = sst [smem:[#allocation28_spill]] %s2580_s5 }
   0x4   :  { %14 = vsyncpa [#allocation4], 0 }
   0x5   :  { %16 = vsyncpa [#allocation4 + $0x1], 0 }
   0x6   :  { %17 = vsyncpa [#allocation7], 0 }
   0x7   :  { %19 = vsyncpa [#allocation7 + $0x1], 0 }
   0x8   :  { %20 = vsyncpa [#allocation10], 0 }
   0x9   :  { %21 = vsyncpa [#allocation5], 0 }
   0xa   :  { %23 = vsyncpa [#allocation5 + $0x1], 0 }
   0xb   :  { %24 = vsyncpa [#allocation14], 0 }
   0xc   :  { %26 = vsyncpa [#allocation14 + $0x1], 0  ;;  %s2129_s27 = smov 0   ;;  %s2131_s28 = smov 0  }
   0xd   :  { %s2133_s29 = smov 0   ;;  %s2135_s30 = smov 0  }
   0xe   :  { %s2137_s9 = smov 0   ;;  %s2139_s10 = smov 0  }
   0xf LB: > { %2607 = sst [smem:[#allocation20_spill]] %s2043_s27  ;;  %s2160_s11 = sadd.s32 4294967295, %s2063_s10   ;;  %s2063_s10 = sphi %s2139_s10, %s32_s10   ;;  %s2059_s9 = sphi %s2137_s9, %s2645_s9   ;;  %s2055_s30 = sphi %s2135_s30, %s2644_s30   ;;  %s2051_s29 = sphi %s2133_s29, %s2648_s29   ;;  %s2047_s28 = sphi %s2131_s28, %s2647_s28   ;;  %s2043_s27 = sphi %s2129_s27, %s2646_s27  }
  0x10   : > { %2608 = sst [smem:[#allocation21_spill]] %s2059_s9  ;;  %s1523_s12 = sadd.s32 4294967294, %s2063_s10  }
  0x11   : > { %2609 = sst [smem:[#allocation22_spill]] %s2063_s10  ;;  %p66_p0 = scmp.ne.s32.totalorder %s2047_s28, %s2043_s27 }
  0x12   : > { %p2584_p1 = scmp.eq.s32.totalorder %s2160_s11, 0  ;;  %p234_p3 = scmp.eq.s32.totalorder %s1523_s12, 1 }
  0x13   : > { %p1524_p5 = scmp.ge.s32.totalorder %s2063_s10, 1  ;;  %p269_p7 = scmp.lt.s32.totalorder %s2063_s10, 3 }
  0x14   : > { %p2169_p4 = por %p2584_p1, %p66_p0  ;;  %p2174_p6 = por %p234_p3, %p66_p0 }
  0x15   : > { %p2179_p8 = pnand %p1524_p5, %p269_p7  ;;  %s2065_s16 = smov [#allocation9]  }
  0x16   : > { %s2610_s13 = scalar_select %p2169_p4, 1, 0 }
  0x17   : > { %s2611_s14 = scalar_select %p2174_p6, 1, 0 }
  0x18   : > { %s2613_s15 = scalar_select %p2179_p8, 1, 0 }
  0x19   : > { %2612 = sst [smem:[#allocation23_spill]] %s2611_s14  ;;  %s281_s17 = sshll.u32 %s2065_s16, 4  ;;  %s282_s17 = int_to_ptr.vmem [resolvable:$true] %s281_s17 }
  0x1a   : > { %p1687_p9 = pneg %p2179_p8  ;;  %s44_s19 = sadd.s32 1, %s2059_s9 }
  0x1b   : > { %s2615_s3 = sld [smem:[#allocation27_spill]] }
  0x1c   : > { %p2188_p11 = pnand %p1687_p9, %p2584_p1 }
  0x1e   : > { %s2614_s18 = scalar_select %p2188_p11, 1, 0 }
  0x1f   : > { %p2596_p13 = pneg %p2188_p11 }
  0x21   : > { %s1795_s22 = scalar_lea.hbm %s2615_s3, 512 }
  0x22   : > { %p1796_p12 = scmp.ne.s32.totalorder %s2615_s3, %s1795_s22  ;;  %p1802_p5 = scmp.lt.u32.totalorder %s1795_s22, %s2615_s3 }
  0x24   : > { %p1798_p0 = pnand %p2596_p13, %p1796_p12 }
  0x26   : > { %p1799_p3 = pneg %p1798_p0 }
  0x28   : > { %p1804_p7 = pnand %p1802_p5, %p1799_p3 }
  0x2a   : > { %1807 = shalt.err (!%p1804_p7)
}
  0x2b   : > { %s1808_s12 = scalar_lea.vmem %s282_s17, 512  ;;  %p1816_p2 = scmp.lt.s32.totalorder %s282_s17, %s282_s17 }
  0x2c   : > { %p1809_p9 = scmp.ne.s32.totalorder %s282_s17, %s1808_s12  ;;  %p1817_p6 = scmp.lt.s32.totalorder %s1808_s12, %s1808_s12 }
  0x2e   : > { %p1811_p10 = pnand %p1809_p9, %p2596_p13  ;;  %p1818_p4 = por %p1817_p6, %p1816_p2 }
  0x30   : > { %p1812_p1 = pneg %p1811_p10 }
  0x32   : > { %p1819_p8 = pnand %p1818_p4, %p1812_p1 }
  0x34   : > { %1822 = shalt.err (!%p1819_p8)
}
  0x35   : > { %s2587_s16 = smov 128   ;;  %s2588_s20 = smov 8  }
  0x36   : > { %1690 = dma.hbm_to_vmem [thread:$0]  (!%p2188_p11), %s2615_s3, 512, %s282_s17, [#allocation10], %s2587_s16, %s2587_s16, %s2588_s20  }
  0x37   : > { %p46_p1 = scmp.ge.s32.totalorder %s44_s19, 2  ;;  %s53_s23 = sadd.s32 1, %s2051_s29 }
  0x38   : > { %p60_p2 = scmp.ne.s32.totalorder %s2051_s29, %s2047_s28  ;;  %p61_p4 = scmp.eq.s32.totalorder %s2063_s10, 0 }
  0x39   : > { %s2650_s19 = smov (%p46_p1, %s44_s19), 0  ;;  %p2617_p8 = scmp.eq.s32.totalorder %s2160_s11, 1 }
  0x3a   : > { %2616 = sst [smem:[#allocation24_spill]] %s2650_s19  ;;  %p62_p6 = por %p61_p4, %p60_p2 }
  0x3b   : > { %p2226_p10 = por %p2617_p8, %p60_p2  ;;  %s48_s25 = ssub.s32 %s2059_s9, %s2650_s19 }
  0x3c   : > { %p1713_p12 = scmp.lt.s32.totalorder %s2063_s10, 2  ;;  %p51_p0 = scmp.eq.s32.totalorder %s48_s25, 0 }
  0x3d   : > { %s2618_s24 = scalar_select %p2226_p10, 1, 0 }
  0x3e   : > { %s2589_s26 = sand.u32 1, %s2051_s29   ;;  %s2239_s12 = sshll.u32 %s2059_s9, 7 }
  0x3f   : > { %s2236_s17 = sshll.u32 %s2589_s26, 3  ;;  %p2244_p3 = pnand %p1713_p12, %p62_p6 }
  0x40   : > { %s2242_s21 = scalar_select %p51_p0, %s2051_s29, %s53_s23  }
  0x41   : > { %s2620_s22 = scalar_select %p2244_p3, 1, 0 }
  0x42   : > { %2619 = sst [smem:[#allocation25_spill]] %s2242_s21  ;;  %s333_s16 = sand.u32 1, %s2063_s10  }
  0x43   : > { %s2621_s1 = sld [smem:[#allocation26_spill]]  ;;  %s337_s26 = scalar_lea.vmem [#allocation6], %s2236_s17 }
  0x44   : > { %s344_s19 = sshll.u32 %s337_s26, 4  ;;  %s2068_s23 = smov [#allocation11]   ;;  %s2256_s19 = int_to_ptr.vmem [resolvable:$true] %s344_s19 }
  0x45   : > { %s2258_s9 = sshll.u32 %s2068_s23, 4  ;;  %s2260_s21 = scalar_lea.sflag [#allocation7], %s333_s16  ;;  %s298_s9 = int_to_ptr.vmem [resolvable:$true] %s2258_s9 }
  0x46   : > { %p2266_p7 = pneg %p2244_p3 }
  0x48   : > { %s2622_s3 = scalar_select %p2266_p7, 1, 0 }
  0x49   : > { %s2253_s25 = scalar_lea.hbm %s2621_s1, %s2239_s12  ;;  %s1828_s10 = scalar_lea.hbm %s2621_s1, 256 }
  0x4a   : > { %s1823_s14 = scalar_lea.hbm %s2253_s25, 128  ;;  %p1829_p2 = scmp.lt.u32.totalorder %s2253_s25, %s2621_s1 }
  0x4b   : > { %p1824_p5 = scmp.ne.s32.totalorder %s2253_s25, %s1823_s14  ;;  %p1830_p4 = scmp.lt.u32.totalorder %s1828_s10, %s1823_s14 }
  0x4c   : > { %p1832_p8 = scmp.lt.u32.totalorder %s1823_s14, %s2253_s25 }
  0x4d   : > { %p1826_p9 = pnand %p2266_p7, %p1824_p5  ;;  %p1831_p6 = por %p1830_p4, %p1829_p2 }
  0x4f   : > { %p1827_p1 = pneg %p1826_p9  ;;  %p1833_p12 = por %p1832_p8, %p1831_p6 }
  0x51   : > { %p1834_p0 = pnand %p1833_p12, %p1827_p1 }
  0x53   : > { %1837 = shalt.err (!%p1834_p0)
}
  0x54   : > { %s1838_s16 = scalar_lea.vmem %s2256_s19, 128  ;;  %s2069_s20 = smov [#allocation6]  }
  0x55   : > { %p1839_p5 = scmp.ne.s32.totalorder %s2256_s19, %s1838_s16  ;;  %s1843_s26 = sshll.u32 %s2069_s20, 4  ;;  %s1844_s26 = int_to_ptr.vmem [resolvable:$false] %s1843_s26 }
  0x56   : > { %s1845_s27 = scalar_lea.vmem %s1844_s26, 256  ;;  %p1846_p10 = scmp.lt.s32.totalorder %s2256_s19, %s1844_s26 }
  0x57   : > { %p1841_p9 = pnand %p1839_p5, %p2266_p7  ;;  %p1847_p11 = scmp.lt.s32.totalorder %s1845_s27, %s1838_s16 }
  0x59   : > { %p1842_p13 = pneg %p1841_p9  ;;  %p1848_p2 = por %p1847_p11, %p1846_p10 }
  0x5b   : > { %p1849_p4 = pnand %p1848_p2, %p1842_p13 }
  0x5d   : > { %1852 = shalt.err (!%p1849_p4)
}
  0x5e   : > { %1700 = dma.hbm_to_vmem [thread:$0]  (!%p2244_p3), %s2253_s25, 128, %s2256_s19, %s2260_s21  }
  0x5f   : > { %s2623_s5 = sld [smem:[#allocation28_spill]]  ;;  %p2624_p11 = scmp.ne.s32.totalorder %s2614_s18, 0 }
  0x61   : > { %p2625_p13 = pneg %p2624_p11 }
  0x65   : > { %s1853_s23 = scalar_lea.hbm %s2623_s5, 512 }
  0x66   : > { %p1854_p1 = scmp.ne.s32.totalorder %s2623_s5, %s1853_s23  ;;  %p1860_p8 = scmp.lt.u32.totalorder %s1853_s23, %s2623_s5 }
  0x68   : > { %p1856_p10 = pnand %p1854_p1, %p2625_p13 }
  0x6a   : > { %p1857_p6 = pneg %p1856_p10 }
  0x6c   : > { %p1862_p12 = pnand %p1860_p8, %p1857_p6 }
  0x6e   : > { %1865 = shalt.err (!%p1862_p12)
}
  0x6f   : > { %s1866_s19 = scalar_lea.vmem %s298_s9, 512  ;;  %p2626_p5 = pmov %p2625_p13 }
  0x70   : > { %p1867_p0 = scmp.ne.s32.totalorder %s298_s9, %s1866_s19  ;;  %p1874_p4 = scmp.lt.s32.totalorder %s298_s9, %s298_s9 }
  0x71   : > { %p1875_p3 = scmp.lt.s32.totalorder %s1866_s19, %s1866_s19 }
  0x72   : > { %p1869_p9 = pnand %p1867_p0, %p2626_p5 }
  0x73   : > { %p1876_p7 = por %p1875_p3, %p1874_p4 }
  0x74   : > { %p1870_p2 = pneg %p1869_p9 }
  0x76   : > { %p1877_p1 = pnand %p1876_p7, %p1870_p2 }
  0x78   : > { %1880 = shalt.err (!%p1877_p1)
}
  0x79   : > { %s2627_s1 = smov 8   ;;  %s2628_s25 = smov 128  }
  0x7a   : > { %1693 = dma.hbm_to_vmem [thread:$0]  (!%p2624_p11), %s2623_s5, 512, %s298_s9, [#allocation10], %s2628_s25, %s2628_s25, %s2627_s1  }
  0x7b   : > { %s2318_s20 = scalar_lea.hbm %s2575_s0, %s2239_s12  ;;  %s318_s18 = scalar_lea.vmem [#allocation3], %s2236_s17 }
  0x7c   : > { %s326_s16 = sshll.u32 %s318_s18, 4  ;;  %s2327_s27 = scalar_lea.hbm %s2577_s2, %s2239_s12  ;;  %s2321_s16 = int_to_ptr.vmem [resolvable:$true] %s326_s16 }
  0x7d   : > { %s2629_s10 = sand.u32 1, %s2051_s29   ;;  %s1881_s1 = scalar_lea.hbm %s2318_s20, 128 }
  0x7e   : > { %s315_s9 = scalar_lea.sflag [#allocation4], %s2629_s10  ;;  %p1882_p3 = scmp.ne.s32.totalorder %s2318_s20, %s1881_s1 }
  0x7f   : > { %p2630_p7 = scmp.ne.s32.totalorder %s2622_s3, 0  ;;  %s1886_s23 = scalar_lea.hbm %s2575_s0, 256 }
  0x80   : > { %p1887_p10 = scmp.lt.u32.totalorder %s2318_s20, %s2575_s0  ;;  %p1888_p6 = scmp.lt.u32.totalorder %s1886_s23, %s1881_s1 }
  0x81   : > { %p1884_p11 = pnand %p1882_p3, %p2630_p7  ;;  %p1890_p12 = scmp.lt.u32.totalorder %s1881_s1, %s2318_s20 }
  0x82   : > { %p1889_p8 = por %p1888_p6, %p1887_p10 }
  0x83   : > { %p1885_p13 = pneg %p1884_p11 }
  0x84   : > { %p1891_p0 = por %p1890_p12, %p1889_p8 }
  0x86   : > { %p1892_p5 = pnand %p1891_p0, %p1885_p13 }
  0x88   : > { %1895 = shalt.err (!%p1892_p5)
}
  0x89   : > { %s1896_s12 = scalar_lea.vmem %s2321_s16, 128  ;;  %s2070_s26 = smov [#allocation3]  }
  0x8a   : > { %p1897_p9 = scmp.ne.s32.totalorder %s2321_s16, %s1896_s12  ;;  %s1901_s19 = sshll.u32 %s2070_s26, 4  ;;  %s1902_s19 = int_to_ptr.vmem [resolvable:$false] %s1901_s19 }
  0x8b   : > { %s1903_s5 = scalar_lea.vmem %s1902_s19, 256  ;;  %p1904_p1 = scmp.lt.s32.totalorder %s2321_s16, %s1902_s19 }
  0x8c   : > { %p1899_p2 = pnand %p1897_p9, %p2630_p7  ;;  %p1905_p3 = scmp.lt.s32.totalorder %s1903_s5, %s1896_s12 }
  0x8e   : > { %p1900_p4 = pneg %p1899_p2  ;;  %p1906_p11 = por %p1905_p3, %p1904_p1 }
  0x90   : > { %p1907_p10 = pnand %p1906_p11, %p1900_p4 }
  0x92   : > { %1910 = shalt.err (!%p1907_p10)
}
  0x93   : > { %p2631_p13 = scmp.ne.s32.totalorder %s2620_s22, 0  ;;  %s355_s10 = scalar_lea.vmem [#allocation8], %s2236_s17 }
  0x94   : > { %s362_s1 = sshll.u32 %s355_s10, 4  ;;  %s1911_s25 = scalar_lea.hbm %s2327_s27, 128  ;;  %s363_s1 = int_to_ptr.vmem [resolvable:$true] %s362_s1 }
  0x95   : > { %1697 = dma.hbm_to_vmem [thread:$0]  (!%p2631_p13), %s2318_s20, 128, %s2321_s16, %s315_s9  }
  0x96   : > { %p1912_p6 = scmp.ne.s32.totalorder %s2327_s27, %s1911_s25  ;;  %s1916_s18 = scalar_lea.hbm %s2577_s2, 256 }
  0x97   : > { %p1917_p0 = scmp.lt.u32.totalorder %s2327_s27, %s2577_s2  ;;  %p1918_p5 = scmp.lt.u32.totalorder %s1916_s18, %s1911_s25 }
  0x98   : > { %p1914_p8 = pnand %p1912_p6, %p2630_p7  ;;  %p1920_p2 = scmp.lt.u32.totalorder %s1911_s25, %s2327_s27 }
  0x99   : > { %p1919_p9 = por %p1918_p5, %p1917_p0 }
  0x9a   : > { %p1915_p12 = pneg %p1914_p8 }
  0x9b   : > { %p1921_p4 = por %p1920_p2, %p1919_p9 }
  0x9d   : > { %p1922_p1 = pnand %p1921_p4, %p1915_p12 }
  0x9f   : > { %1925 = shalt.err (!%p1922_p1)
}
  0xa0   : > { %s1926_s17 = scalar_lea.vmem %s363_s1, 128  ;;  %s2071_s20 = smov [#allocation8]  }
  0xa1   : > { %p1927_p3 = scmp.ne.s32.totalorder %s363_s1, %s1926_s17  ;;  %s1931_s16 = sshll.u32 %s2071_s20, 4  ;;  %s1932_s16 = int_to_ptr.vmem [resolvable:$false] %s1931_s16 }
  0xa2   : > { %s1933_s9 = scalar_lea.vmem %s1932_s16, 256  ;;  %p1934_p6 = scmp.lt.s32.totalorder %s363_s1, %s1932_s16 }
  0xa3   : > { %p1929_p11 = pnand %p1927_p3, %p2630_p7  ;;  %p1935_p8 = scmp.lt.s32.totalorder %s1933_s9, %s1926_s17 }
  0xa5   : > { %p1930_p10 = pneg %p1929_p11  ;;  %p1936_p13 = por %p1935_p8, %p1934_p6 }
  0xa7   : > { %p1937_p0 = pnand %p1936_p13, %p1930_p10 }
  0xa9   : > { %1940 = shalt.err (!%p1937_p0)
}
  0xaa   : > { %p2632_p5 = scmp.ne.s32.totalorder %s2620_s22, 0  ;;  %p2633_p12 = scmp.ne.s32.totalorder %s2613_s15, 0 }
  0xab   : > { %s2374_s3 = sand.u32 (!%p2633_p12), 1, %s2047_s28   ;;  %p2634_p7 = scmp.ne.s32.totalorder (!%p2633_p12), %s2610_s13, 0 }
  0xac   : > { %1703 = dma.hbm_to_vmem [thread:$0]  (!%p2632_p5), %s2327_s27, 128, %s363_s1, %s2260_s21  }
  0xad   : > { %371 = sbr.rel (%p2633_p12) target bundleno = 2097 (0x831), region = 48  ;;  %s2377_s19 = sshll.u32 (!%p2633_p12), %s2374_s3, 3 }
  0xae   : > { %s374_s5 = scalar_lea.sflag (!%p2633_p12), [#allocation4], %s2374_s3  ;;  %s377_s10 = scalar_lea.vmem (!%p2633_p12), [#allocation3], %s2377_s19 }
  0xb4   : > { %2022 = dma.done.wait (%p2634_p7), %s374_s5, 128  }
  0xb5   : > { %2024 = vsyncadd (%p2634_p7), %s374_s5, 4294967168  ;;  %s382_s15 = sand.u32 1, %s2160_s11   ;;  %s386_s22 = scalar_lea.vmem [#allocation6], %s2377_s19 }
  0xb6   : > { %s383_s21 = scalar_lea.sflag [#allocation7], %s382_s15 }
  0xb7   : > { %2026 = dma.done.wait (%p2634_p7), %s383_s21, 256  }
  0xb8   : > { %2028 = vsyncadd (%p2634_p7), %s383_s21, 4294967040  ;;  %s395_s27 = scalar_lea.vmem [#allocation8], %s2377_s19  ;;  %p2635_p13 = scmp.eq.s32.totalorder %s2160_s11, 0 }
  0xba   : > { %2030 = dma.done.wait (%p2635_p13), [#allocation10], 1024   ;;  %p2636_p9 = pmov %p2635_p13 }
  0xbb   : > { %v2072_v0 = vmov 0.0|0.0   ;;  %vm2073_vm0 = vmmov 0   ;;  %v2074_v1 = vmov 0.0   ;;  %v452_v2 = vld [vmem:[#allocation9] sm:$0xff]  ;;  %v453_v3 = vld [vmem:[#allocation9 + $0x8] sm:$0xff]  ;;  %v454_v4 = vld [vmem:[#allocation9 + $0x10] sm:$0xff] }
  0xbc   : > { %2032 = vsyncadd (%p2636_p9), [#allocation10], 4294966272  ;;  %1657 = vmatprep.subr.bf16.mxu0 %v2072_v0  ;;  %1603 = vmatprep.mubr.msk.f32.mxu0 %vm2073_vm0, %v2074_v1  ;;  %v1658_v5 = vpack.c.bf16 %v453_v3, %v452_v2  ;;  %v455_v6 = vld [vmem:[#allocation9 + $0x18] sm:$0xff]  ;;  %vm463_vm1 = vcmask 261120   ;;  %v538_v9 = vld [vmem:[%s386_s22] sm:$0xff]  ;;  %s2075_s11 = smov 120  }
  0xbd   : > { %1606 = vmatprep.subr.mxu1 %v2074_v1  ;;  %1608 = vmatprep.mubr.msk.f32.mxu1 %vm2073_vm0, %v2074_v1  ;;  %v1661_v7 = vpack.c.bf16 %v455_v6, %v454_v4  ;;  %v451_v8 = vld [vmem:[%s377_s10] sm:$0xff]  ;;  %vm540_vm2 = vcmask 64512   ;;  %v1542_v10 = vld [vmem:[%s2579_s4] ss:$0 sm:$0xff]  ;;  %s2076_s25 = smov 112   ;;  %s2077_s14 = smov 104  }
  0xbe   : > { %1659 = vmatpush3.bf16.msra.mxu0 %v1658_v5  ;;  %705 = vrot.lane.b32.xlu1 %v538_v9, %s2075_s11  ;;  %v2424_v23 = vld [vmem:[%s395_s27] sm:$0xff]  ;;  %s1541_s23 = sshll.u32 %s2374_s3, 5  ;;  %s2078_s12 = smov 8   ;;  %vm875_vm3 = vcmask 130112   ;;  %vm1048_vm4 = vcmask 195712   ;;  %vm1221_vm5 = vcmask 261312  }
  0xbf   : > { %1660 = vmatprep.subr.bf16.mxu0 %v2072_v0  ;;  %1607 = vmatpush3.xpose.msk.msra.mxu1 %vm540_vm2, %v538_v9  ;;  %s2440_s18 = scalar_lea.vmem [#allocation13], %s1541_s23  ;;  %s2079_s26 = smov 16  }
  0xc0   : > { %1611 = vmatprep.subr.mxu1 %v2074_v1  ;;  %s2080_s17 = smov 24   ;;  %s1568_s20 = sshll.u32 %s2055_s30, 9 }
  0xc1   : > { %s1343_s16 = sshll.u32 %s2440_s18, 4  ;;  %s2488_s10 = scalar_lea.hbm %s2583_s8, %s1568_s20  ;;  %s2490_s16 = int_to_ptr.vmem [resolvable:$true] %s1343_s16 }
  0xc2   : > { %1662 = vmatpush3.bf16.msra.mxu0 %v1661_v7  ;;  %s1315_s15 = scalar_lea.sflag [#allocation14], %s2374_s3  ;;  %s1941_s21 = scalar_lea.vmem %s2490_s16, 512 }
  0xc3   : > { %1626 = vmatprep.subr.mxu0 %v2074_v1  ;;  %p1942_p2 = scmp.ne.s32.totalorder %s2490_s16, %s1941_s21  ;;  %p2637_p4 = scmp.ne.s32.totalorder %s2618_s24, 0 }
  0xc4   : > { %s2081_s22 = smov [#allocation13]  }
  0xc5   : > { %1604 = vmatmul.mubr.msk.f32.vlgmr.msra.gmra.mrb[0].mxu0 %vm463_vm1, %v451_v8  ;;  %p1943_p1 = pnand %p1942_p2, %p2637_p4  ;;  %s1945_s27 = sshll.u32 %s2081_s22, 4  ;;  %s1946_s27 = int_to_ptr.vmem [resolvable:$false] %s1945_s27 }
  0xc6   : > { %1628 = vmatprep.mubr.msk.f32.mxu0 %vm2073_vm0, %v2074_v1  ;;  %p1948_p11 = scmp.lt.s32.totalorder %s2490_s16, %s1946_s27 }
  0xc7   : > { %p1944_p3 = pneg %p1943_p1 }
 0x130   : > { %v706_v24 = vpop.permute.xlu1 %705 }
 0x198   : > { %v533_v11 = vpop.f32.mrb[0].mxu0 }
 0x199   : > { %v534_v12 = vadd.f32 %v1542_v10, %v533_v11  ;;  %v1605_v13 = vpop.f32.mrb[1].mxu0  ;;  %v1225_v10 = vld [vmem:[#allocation11 + $0x8] sm:$0xff] }
 0x19a   : > { %v1227_v13 = vld [vmem:[#allocation11 + $0x18] sm:$0xff] }
 0x19b   : > { %v537_v14 = vmul.f32 0.35355338, %v534_v12  ;;  %v1226_v12 = vld [vmem:[#allocation11 + $0x10] sm:$0xff] }
 0x19d   : > { %703 = vrot.lane.b32.xlu1 %v537_v14, %s2075_s11  ;;  %1609 = vmatmul.mubr.msk.f32.vlgmr.msra.gmra.mrb[0].mxu1 %vm540_vm2, %v537_v14 }
 0x19e   : > { %1613 = vmatprep.mubr.msk.f32.mxu1 %vm2073_vm0, %v2074_v1  ;;  %1612 = vmatpush3.msra.mxu1 %v2424_v23 }
 0x19f   : > { %1616 = vmatprep.subr.mxu1 %v2074_v1 }
 0x1a1   : > { %877 = vrot.lane.b32.xlu1 %v537_v14, %s2076_s25 }
 0x1a5   : > { %1052 = vrot.lane.b32.xlu1 %v538_v9, %s2077_s14 }
 0x1a9   : > { %1050 = vrot.lane.b32.xlu1 %v537_v14, %s2077_s14  ;;  %v1667_v14 = vpack.c.bf16 %v1227_v13, %v1226_v12 }
 0x20f   : > { %v704_v25 = vpop.permute.xlu1 %703 }
 0x213   : > { %v878_v26 = vpop.permute.xlu1 %877 }
 0x217   : > { %v1053_v29 = vpop.permute.xlu1 %1052 }
 0x21b   : > { %v1051_v31 = vpop.permute.xlu1 %1050 }
 0x270   : > { %v613_v15 = vpop.f32.mrb[0].mxu1 }
 0x271   : > { %v1610_v16 = vpop.f32.mrb[1].mxu1  ;;  %v617_v17 = vsel %vm540_vm2, %v613_v15, -inf }
 0x272   : > { %618 = vmax.xlane.f32.xlu0 %v617_v17 }
 0x2ff   : > { %v619_v18 = vpop.xlane.xlu0 %618 }
 0x300   : > { %v620_v19 = vsub.f32 %v613_v15, %v619_v18 }
 0x302   : > { %v621_v20 = vmul.f32 1.442695, %v620_v19 }
 0x304   : > { %1779 = vpow2.f32 %v621_v20 }
 0x30e   : > { %v1780_v21 = vpop.eup %1779 }
 0x30f   : > { %v623_v22 = vsel %vm540_vm2, %v1780_v21, 0.0 }
 0x310   : > { %624 = vadd.xlane.f32.xlu0 %v623_v22 }
 0x326   : > { %879 = vrot.lane.b32.xlu0 %v538_v9, %s2076_s25  ;;  %v1224_v9 = vld [vmem:[#allocation11] sm:$0xff] }
 0x327   : > { %v1664_v11 = vpack.c.bf16 %v1225_v10, %v1224_v9 }
 0x39d   : > { %v625_v27 = vpop.xlane.xlu0 %624 }
 0x39e   : > { %1781 = vrcp.f32 %v625_v27 }
 0x3a1   : > { %v880_v28 = vpop.permute.xlu0 %879 }
 0x3a2   : > { %1627 = vmatpush3.xpose.msk.msra.mxu0 %vm540_vm2, %v880_v28 }
 0x3a3   : > { %1636 = vmatprep.subr.mxu0 %v2074_v1 }
 0x3a5   : > { %1629 = vmatmul.mubr.msk.f32.vlgmr.msra.gmra.mrb[2].mxu0 %vm540_vm2, %v878_v26 }
 0x3a6   : > { %1637 = vmatpush3.xpose.msk.msra.mxu0 %vm540_vm2, %v1053_v29  ;;  %1638 = vmatprep.mubr.msk.f32.mxu0 %vm2073_vm0, %v2074_v1 }
 0x3a7   : > { %1663 = vmatprep.subr.bf16.mxu0 %v2072_v0 }
 0x3a8   : > { %v1782_v30 = vpop.eup %1781 }
 0x3a9   : > { %v627_v32 = vmul.f32 %v1782_v30, %v1780_v21  ;;  %1639 = vmatmul.mubr.msk.f32.vlgmr.msra.gmra.mrb[4].mxu0 %vm540_vm2, %v1051_v31 }
 0x3aa   : > { %1654 = vmatprep.mubr.msk.f32.mxu0 %vm2073_vm0, %v2074_v1  ;;  %1665 = vmatpush3.bf16.msra.mxu0 %v1664_v11 }
 0x3ab   : > { %628 = vst.msk [vmem:[%s2440_s18] sm:$0xff] %vm540_vm2, %v627_v32  ;;  %1614 = vmatmul.mubr.msk.f32.vlgmr.msra.gmra.mrb[2].mxu1 %vm540_vm2, %v627_v32  ;;  %1666 = vmatprep.subr.bf16.mxu0 %v2072_v0 }
 0x3ac   : > { %1617 = vmatpush3.xpose.msk.msra.mxu1 %vm540_vm2, %v706_v24  ;;  %1618 = vmatprep.mubr.msk.f32.mxu1 %vm2073_vm0, %v2074_v1 }
 0x3ad   : > { %1621 = vmatprep.subr.mxu1 %v2074_v1 }
 0x3ae   : > { %1668 = vmatpush3.bf16.msra.mxu0 %v1667_v14 }
 0x3af   : > { %1619 = vmatmul.mubr.msk.f32.vlgmr.msra.gmra.mrb[4].mxu1 %vm540_vm2, %v704_v25 }
 0x3b0   : > { %1623 = vmatprep.mubr.msk.f32.mxu1 %vm2073_vm0, %v2074_v1 }
 0x478   : > { %v951_v33 = vpop.f32.mrb[2].mxu0 }
 0x479   : > { %v1630_v34 = vpop.f32.mrb[3].mxu0  ;;  %v955_v35 = vsel %vm540_vm2, %v951_v33, -inf }
 0x47a   : > { %956 = vmax.xlane.f32.xlu0 %v955_v35 }
 0x47c   : > { %v1124_v36 = vpop.f32.mrb[4].mxu0 }
 0x47d   : > { %v1640_v37 = vpop.f32.mrb[5].mxu0  ;;  %v1128_v43 = vsel %vm540_vm2, %v1124_v36, -inf }
 0x47e   : > { %v698_v38 = vpop.f32.mrb[2].mxu1 }
 0x47f   : > { %702 = vst.msk [vmem:[#allocation2] sm:$0xff] %vm540_vm2, %v698_v38  ;;  %v1615_v39 = vpop.f32.mrb[3].mxu1 }
 0x482   : > { %v777_v40 = vpop.f32.mrb[4].mxu1 }
 0x483   : > { %v1620_v41 = vpop.f32.mrb[5].mxu1  ;;  %v781_v42 = vsel %vm540_vm2, %v777_v40, -inf }
 0x484   : > { %782 = vmax.xlane.f32.xlu1 %v781_v42 }
 0x488   : > { %1129 = vmax.xlane.f32.xlu1 %v1128_v43 }
 0x507   : > { %v957_v44 = vpop.xlane.xlu0 %956 }
 0x508   : > { %v958_v45 = vsub.f32 %v951_v33, %v957_v44 }
 0x50a   : > { %v959_v46 = vmul.f32 1.442695, %v958_v45 }
 0x50c   : > { %1783 = vpow2.f32 %v959_v46 }
 0x511   : > { %v783_v47 = vpop.xlane.xlu1 %782 }
 0x512   : > { %v784_v55 = vsub.f32 %v777_v40, %v783_v47 }
 0x514   : > { %v785_v56 = vmul.f32 1.442695, %v784_v55 }
 0x515   : > { %v1130_v48 = vpop.xlane.xlu1 %1129 }
 0x516   : > { %v1784_v49 = vpop.eup %1783  ;;  %v1131_v50 = vsub.f32 %v1124_v36, %v1130_v48 }
 0x517   : > { %v961_v51 = vsel %vm540_vm2, %v1784_v49, 0.0 }
 0x518   : > { %v1132_v52 = vmul.f32 1.442695, %v1131_v50  ;;  %962 = vadd.xlane.f32.xlu0 %v961_v51 }
 0x51a   : > { %1785 = vpow2.f32 %v1132_v52 }
 0x51b   : > { %1787 = vpow2.f32 %v785_v56 }
 0x524   : > { %v1786_v53 = vpop.eup %1785 }
 0x525   : > { %v1134_v54 = vsel %vm540_vm2, %v1786_v53, 0.0  ;;  %v1788_v57 = vpop.eup %1787 }
 0x526   : > { %1135 = vadd.xlane.f32.xlu1 %v1134_v54  ;;  %v787_v58 = vsel %vm540_vm2, %v1788_v57, 0.0 }
 0x52e   : > { %795 = vrot.lane.b32.xlu0 %v2424_v23, %s2075_s11  ;;  %s1947_s11 = scalar_lea.vmem %s1946_s27, 1024 }
 0x52f   : > { %p1949_p10 = scmp.lt.s32.totalorder %s1947_s11, %s1941_s21 }
 0x531   : > { %p1950_p6 = por %p1949_p10, %p1948_p11 }
 0x533   : > { %p1951_p8 = pnand %p1950_p6, %p1944_p3 }
 0x537   : > { %968 = vrot.lane.b32.xlu1 %v2424_v23, %s2076_s25 }
 0x55b   : > { %788 = vadd.xlane.f32.xlu1 %v787_v58 }
 0x56c   : > { %1141 = vrot.lane.b32.xlu1 %v2424_v23, %s2077_s14 }
 0x5a5   : > { %v963_v59 = vpop.xlane.xlu0 %962 }
 0x5a6   : > { %1789 = vrcp.f32 %v963_v59 }
 0x5a9   : > { %v796_v60 = vpop.permute.xlu0 %795 }
 0x5aa   : > { %1622 = vmatpush3.msra.mxu1 %v796_v60 }
 0x5ab   : > { %1631 = vmatprep.subr.mxu1 %v2074_v1 }
 0x5b0   : > { %v1790_v61 = vpop.eup %1789 }
 0x5b1   : > { %v965_v62 = vmul.f32 %v1790_v61, %v1784_v49 }
 0x5b3   : > { %1553 = vst.msk [vmem:[%s2440_s18 + $0x10] sm:$0xff] %vm540_vm2, %v965_v62  ;;  %v1136_v63 = vpop.xlane.xlu1 %1135 }
 0x5b4   : > { %1791 = vrcp.f32 %v1136_v63 }
 0x5b7   : > { %v969_v4 = vpop.permute.xlu1 %968 }
 0x5be   : > { %v1792_v2 = vpop.eup %1791 }
 0x5bf   : > { %v1138_v3 = vmul.f32 %v1792_v2, %v1786_v53 }
 0x5c1   : > { %1557 = vst.msk [vmem:[%s2440_s18 + $0x18] sm:$0xff] %vm540_vm2, %v1138_v3 }
 0x5e8   : > { %v789_v5 = vpop.xlane.xlu1 %788 }
 0x5e9   : > { %1793 = vrcp.f32 %v789_v5 }
 0x5ec   : > { %v1142_v8 = vpop.permute.xlu1 %1141 }
 0x5f3   : > { %v1794_v6 = vpop.eup %1793 }
 0x5f4   : > { %v791_v7 = vmul.f32 %v1794_v6, %v1788_v57 }
 0x5f6   : > { %1549 = vst.msk [vmem:[%s2440_s18 + $0x8] sm:$0xff] %vm540_vm2, %v791_v7  ;;  %1624 = vmatmul.mubr.msk.f32.vlgmr.msra.gmra.mrb[6].mxu1 %vm540_vm2, %v791_v7 }
 0x5f7   : > { %1632 = vmatpush3.msra.mxu1 %v969_v4  ;;  %1633 = vmatprep.mubr.msk.f32.mxu1 %vm2073_vm0, %v2074_v1 }
 0x5f8   : > { %1641 = vmatprep.subr.mxu1 %v2074_v1 }
 0x5fa   : > { %1634 = vmatmul.mubr.msk.f32.vlgmr.msra.gmra.mrb[8].mxu1 %vm540_vm2, %v965_v62 }
 0x5fb   : > { %1642 = vmatpush3.msra.mxu1 %v1142_v8  ;;  %1643 = vmatprep.mubr.msk.f32.mxu1 %vm2073_vm0, %v2074_v1 }
 0x5fe   : > { %1644 = vmatmul.mubr.msk.f32.vlgmr.msra.gmra.mrb[10].mxu1 %vm540_vm2, %v1138_v3 }
 0x6c9   : > { %v867_v15 = vpop.f32.mrb[6].mxu1 }
 0x6ca   : > { %872 = vrot.lane.b32.xlu0 %v867_v15, %s2078_s12  ;;  %v1625_v16 = vpop.f32.mrb[7].mxu1 }
 0x6cd   : > { %v1040_v17 = vpop.f32.mrb[8].mxu1 }
 0x6ce   : > { %1045 = vrot.lane.b32.xlu1 %v1040_v17, %s2079_s26  ;;  %v1635_v1 = vpop.f32.mrb[9].mxu1 }
 0x6d1   : > { %v1213_v18 = vpop.f32.mrb[10].mxu1 }
 0x6d2   : > { %1218 = vrot.lane.b32.xlu0 %v1213_v18, %s2080_s17  ;;  %v1645_v19 = vpop.f32.mrb[11].mxu1 }
 0x73c   : > { %v873_v20 = vpop.permute.xlu0 %872 }
 0x73d   : > { %876 = vst.msk [vmem:[#allocation2] sm:$0xff] %vm875_vm3, %v873_v20 }
 0x740   : > { %v1046_v0 = vpop.permute.xlu1 %1045 }
 0x741   : > { %1049 = vst.msk [vmem:[#allocation2] sm:$0xff] %vm1048_vm4, %v1046_v0 }
 0x744   : > { %v1219_v21 = vpop.permute.xlu0 %1218 }
 0x745   : > { %1222 = vst.msk [vmem:[#allocation2] sm:$0xff] %vm1221_vm5, %v1219_v21 }
 0x74c   : > { %v1223_v22 = vld [vmem:[#allocation2] sm:$0xff] }
 0x74d   : > { %1655 = vmatmul.mubr.msk.f32.vlgmr.msra.gmra.mrb[6].mxu0 %vm463_vm1, %v1223_v22 }
 0x74e   : > { %1954 = shalt.err (!%p1951_p8)
}
 0x74f   : > { %s1955_s13 = scalar_lea.hbm %s2488_s10, 512  ;;  %s1959_s14 = scalar_lea.hbm %s2583_s8, 1024 }
 0x750   : > { %p1956_p0 = scmp.ne.s32.totalorder %s2488_s10, %s1955_s13  ;;  %p1960_p7 = scmp.lt.u32.totalorder %s2488_s10, %s2583_s8 }
 0x751   : > { %p1961_p13 = scmp.lt.u32.totalorder %s1959_s14, %s1955_s13  ;;  %p1963_p2 = scmp.lt.u32.totalorder %s1955_s13, %s2488_s10 }
 0x752   : > { %p1957_p5 = pnand %p1956_p0, %p2637_p4 }
 0x753   : > { %p1962_p9 = por %p1961_p13, %p1960_p7 }
 0x754   : > { %p1958_p12 = pneg %p1957_p5 }
 0x755   : > { %p1964_p1 = por %p1963_p2, %p1962_p9 }
 0x757   : > { %p1965_p3 = pnand %p1964_p1, %p1958_p12 }
 0x759   : > { %1968 = shalt.err (!%p1965_p3)
}
 0x75a   : > { %s2082_s26 = smov 128   ;;  %v1559_v23 = vld [vmem:[%s2581_s6] ss:$0 sm:$0xff]  ;;  %s1563_s9 = sshll.u32 %s2055_s30, 7 }
 0x75b   : > { %1684 = dma.vmem_to_hbm [thread:$0]  (%p2637_p4), %s2490_s16, 512, %s2488_s10, %s1315_s15, %s2082_s26, %s2082_s26, %s2078_s12  }
 0x75c   : > { %s443_s5 = scalar_lea.vmem [#allocation12], %s2377_s19  ;;  %s2525_s11 = scalar_lea.hbm %s2582_s7, %s1563_s9 }
 0x75d   : > { %s1329_s21 = sshll.u32 %s443_s5, 4  ;;  %s1310_s12 = scalar_lea.sflag [#allocation5], %s2374_s3  ;;  %s2527_s21 = int_to_ptr.vmem [resolvable:$true] %s1329_s21 }
 0x75e   : > { %s1969_s16 = scalar_lea.vmem %s2527_s21, 128  ;;  %s2083_s30 = smov [#allocation12]  }
 0x75f   : > { %p1970_p11 = scmp.ne.s32.totalorder %s2527_s21, %s1969_s16  ;;  %s1973_s19 = sshll.u32 %s2083_s30, 4  ;;  %s1974_s19 = int_to_ptr.vmem [resolvable:$false] %s1973_s19 }
 0x760   : > { %s1975_s10 = scalar_lea.vmem %s1974_s19, 256  ;;  %p1976_p8 = scmp.lt.s32.totalorder %s2527_s21, %s1974_s19 }
 0x761   : > { %p1971_p10 = pnand %p1970_p11, %p2637_p4  ;;  %p1977_p0 = scmp.lt.s32.totalorder %s1975_s10, %s1969_s16 }
 0x763   : > { %p1972_p6 = pneg %p1971_p10  ;;  %p1978_p5 = por %p1977_p0, %p1976_p8 }
 0x765   : > { %p1979_p12 = pnand %p1978_p5, %p1972_p6 }
 0x820   : > { %v1304_v24 = vpop.f32.mrb[6].mxu0 }
 0x821   : > { %v1305_v25 = vadd.f32 %v1559_v23, %v1304_v24  ;;  %v1656_v26 = vpop.f32.mrb[7].mxu0 }
 0x823   : > { %1308 = vst.msk [vmem:[%s443_s5] sm:$0xff] %vm463_vm1, %v1305_v25 }
 0x824   : > { %1982 = shalt.err (!%p1979_p12)
}
 0x825   : > { %s1983_s3 = scalar_lea.hbm %s2525_s11, 128  ;;  %s1987_s1 = scalar_lea.hbm %s2582_s7, 256 }
 0x826   : > { %p1984_p7 = scmp.ne.s32.totalorder %s2525_s11, %s1983_s3  ;;  %p1988_p2 = scmp.lt.u32.totalorder %s2525_s11, %s2582_s7 }
 0x827   : > { %p1989_p1 = scmp.lt.u32.totalorder %s1987_s1, %s1983_s3  ;;  %p1991_p11 = scmp.lt.u32.totalorder %s1983_s3, %s2525_s11 }
 0x828   : > { %p1985_p13 = pnand %p1984_p7, %p2637_p4 }
 0x829   : > { %p1990_p3 = por %p1989_p1, %p1988_p2 }
 0x82a   : > { %p1986_p9 = pneg %p1985_p13 }
 0x82b   : > { %p1992_p10 = por %p1991_p11, %p1990_p3 }
 0x82d   : > { %p1993_p6 = pnand %p1992_p10, %p1986_p9 }
 0x82f   : > { %1996 = shalt.err (!%p1993_p6)
}
 0x830   : > { %1683 = dma.vmem_to_hbm [thread:$0]  (%p2637_p4), %s2527_s21, 128, %s2525_s11, %s1310_s12  }
 0x831 PF: > { %s2638_s23 = sld [smem:[#allocation20_spill]]  ;;  %s2639_s18 = sld [smem:[#allocation23_spill]] }
 0x832   : > { %s2640_s26 = sld [smem:[#allocation22_spill]] }
 0x837   : > { %s1358_s17 = sand.u32 1, %s2638_s23   ;;  %p2641_p8 = scmp.ne.s32.totalorder %s2639_s18, 0 }
 0x838   : > { %p2642_p0 = scmp.ge.s32.totalorder %s2640_s26, 2  ;;  %s1359_s20 = scalar_lea.sflag [#allocation5], %s1358_s17 }
 0x83a   : > { %p1705_p5 = pnand %p2642_p0, %p2641_p8 }
 0x83c   : > { %2034 = dma.done.wait (!%p1705_p5), %s1359_s20, 128  }
 0x83d   : > { %2036 = vsyncadd (!%p1705_p5), %s1359_s20, 4294967168  ;;  %s1368_s9 = scalar_lea.sflag [#allocation14], %s1358_s17 }
 0x83e   : > { %2038 = dma.done.wait (!%p1705_p5), %s1368_s9, 512  }
 0x83f   : > { %2040 = vsyncadd (!%p1705_p5), %s1368_s9, 4294966784  ;;  %s32_s10 = sadd.s32 1, %s2640_s26   ;;  %s2643_s24 = sld [smem:[#allocation25_spill]] }
 0x840   : > { %p29_p12 = scmp.ge.s32.totalorder %s32_s10, 4   ;;  %s2644_s30 = sld [smem:[#allocation21_spill]] }
 0x841   : > { %s2645_s9 = sld [smem:[#allocation24_spill]]  ;;  %s2646_s27 = smov %s2047_s28 }
 0x842   : > { %s2647_s28 = smov %s2051_s29  ;;  %31 = sbr.rel (!%p29_p12) target bundleno = 15 (0xf), region = 145 }
 0x845   : > { %s2648_s29 = smov %s2643_s24 }
 0x849   :  { %1373 = vsyncpa [#allocation4], 1 }
 0x84a   :  { %1375 = vsyncpa [#allocation4 + $0x1], 1 }
 0x84b   :  { %1376 = vsyncpa [#allocation7], 1 }
 0x84c   :  { %1378 = vsyncpa [#allocation7 + $0x1], 1 }
 0x84d   :  { %1379 = vsyncpa [#allocation10], 1 }
 0x84e   :  { %1380 = vsyncpa [#allocation5], 1 }
 0x84f   :  { %1382 = vsyncpa [#allocation5 + $0x1], 1 }
 0x850   :  { %1383 = vsyncpa [#allocation14], 1 }
 0x851   :  { %1385 = vsyncpa [#allocation14 + $0x1], 1 }

</bundles_post_ra>
